<compile_context>
chip_gen: v7x
topology: tpu7x:2x2x1
jax: 0.10.0
libtpu: 0.0.40
codegen_flags: <defaults>
</compile_context>

<pallas_src>
import numpy as np

import jax
import jax.numpy as jnp
from jax.experimental import pallas as pl
from jax.experimental.pallas import tpu as pltpu


# ------------------------------ model constants ----------------------------- #

B = 2
H = W = 16
C_IN, C_HID = 4, 8
HZ = WZ = 8                  # latent spatial size
LANES = 128                  # W * C_HID  (lane-packed activation width)
Z_OFF = W * C_IN             # 64: z occupies lanes 64:128 (e3 output column offset)
N_CONV = 8

#               name   cin    cout   stride
_CONV_LAYOUT = [("e1",  C_IN,  C_HID, 1),
                ("e2a", C_HID, C_HID, 1),
                ("e2b", C_HID, C_HID, 1),
                ("e3",  C_HID, C_HID, 2),
                ("d1",  C_HID, C_HID, 1),
                ("d2a", C_HID, C_HID, 1),
                ("d2b", C_HID, C_HID, 1),
                ("d3",  C_HID, C_IN,  1)]

# Trace-time 0/1 selection matrices (stride-2 H decimation / nearest H upsample).
_I16 = np.arange(B * HZ)
_J32 = np.arange(B * H)
_SEL = (_J32[None, :] == (_I16[:, None] // HZ) * H + 2 * (_I16[:, None] % HZ)
        ).astype(np.float32)                                            # (16, 32)
_UPH = ((_J32[:, None] // H == _I16[None, :] // HZ) &
        ((_J32[:, None] % H) // 2 == _I16[None, :] % HZ)).astype(np.float32)  # (32, 16)


# -------------------- host-side weight packing (runs once) ------------------ #

def _up_w_matrix():
    """Nearest-neighbour W-duplication in lane space, reading z from lanes
    Z_OFF:Z_OFF+64 (folded into d1's packed weights)."""
    m = np.zeros((LANES, LANES), np.float32)
    for lane in range(W * C_HID):
        x, c = divmod(lane, C_HID)
        m[Z_OFF + (x // 2) * C_HID + c, lane] = 1.0
    return m


def _pack_conv(w_hwio, cin, cout, stride, col_off):
    """Fold 3x3 x-taps + channel mixing + W zero-pad (+ W-stride, + output lane
    offset) into three (128, 128) lane-space matrices, one per y-tap."""
    w = np.asarray(w_hwio, np.float32)               # (3, 3, cin, cout)
    wout = W // stride
    m = np.zeros((3, LANES, LANES), np.float32)
    for ky in range(3):
        for xo in range(wout):
            for kx in range(3):
                xi = stride * xo + kx - 1
                if 0 <= xi < W:
                    m[ky, xi * cin:(xi + 1) * cin,
                          col_off + xo * cout:col_off + (xo + 1) * cout] = w[ky, kx]
    return m


def pack_params(params):
    """-> (w_all (8, 384, 128) bf16, b_all (8, 128) f32), y-taps fused along K."""
    up_w = _up_w_matrix()
    w_list, b_list = [], []
    for name, cin, cout, stride in _CONV_LAYOUT:
        col_off = Z_OFF if name == "e3" else 0
        m = _pack_conv(params[name][0], cin, cout, stride, col_off)
        if name == "d1":                              # fold nearest-W-upsample
            m = np.einsum("ij,kjl->kil", up_w, m)
        w_list.append(np.concatenate([m[0], m[1], m[2]], axis=0))   # (384, 128)

        wout = W // stride
        row = np.zeros((LANES,), np.float32)
        row[col_off:col_off + wout * cout] = np.tile(
            np.asarray(params[name][1], np.float32), wout)
        b_list.append(row)
    return (jnp.asarray(np.stack(w_list), jnp.bfloat16),
            jnp.asarray(np.stack(b_list), jnp.float32))


def init_params(key):
    def conv_init(k, cin, cout, scale=0.1):
        kw_, kb_ = jax.random.split(k)
        w = scale * jax.random.normal(kw_, (3, 3, cin, cout), jnp.float32)
        b = scale * jax.random.normal(kb_, (cout,), jnp.float32)
        return w, b

    keys = jax.random.split(key, N_CONV)
    return {name: conv_init(k, ci, co)
            for (name, ci, co, _), k in zip(_CONV_LAYOUT, keys)}


# --------------------------------- the kernel ------------------------------- #

def _ae_kernel(x_ref, w_hbm, b_ref, sel_ref, uph_ref, out_ref,
               buf0, buf1, wbuf, wsem):
    f32 = jnp.float32

    # Kick off all per-layer weight DMAs immediately; each conv waits only on
    # its own layer, so the 768 KiB weight stream overlaps compute.
    for i in range(N_CONV):
        pltpu.make_async_copy(w_hbm.at[i], wbuf.at[i], wsem.at[i]).start()

    # Zero ONLY the halo rows; interiors are fully overwritten before any read.
    zhalo = jnp.zeros((B, 1, LANES), f32)
    for buf in (buf0, buf1):
        buf[:, 0:1, :] = zhalo
        buf[:, H + 1:H + 2, :] = zhalo

    # Lane-dense input placement (input pre-padded to 128 lanes by the wrapper).
    buf0[:, 1:H + 1, :] = x_ref[...]

    def conv(idx, src, relu=True, skip=None):
        # Wait for this layer's weights (started at kernel entry).
        pltpu.make_async_copy(w_hbm.at[idx], wbuf.at[idx], wsem.at[idx]).wait()
        # Fuse the three y-taps along K: (B*H, 384) x (384, 128) single matmul.
        lhs = jnp.concatenate(
            [src[:, 0:H, :], src[:, 1:H + 1, :], src[:, 2:H + 2, :]],
            axis=-1).reshape(B * H, 3 * LANES).astype(jnp.bfloat16)
        acc = jnp.dot(lhs, wbuf[idx], preferred_element_type=f32)
        acc += b_ref[idx:idx + 1, :]
        if skip is not None:
            acc += skip
        if relu:
            acc = jnp.maximum(acc, 0.0)
        return acc                                            # (32, 128) f32

    def store(dst, val):
        dst[:, 1:H + 1, :] = val.reshape(B, H, LANES)

    # --------------------------------- encoder ------------------------------ #
    e1 = conv(0, buf0)
    store(buf1, e1)
    e2a = conv(1, buf1)
    store(buf0, e2a)
    e2b = conv(2, buf0, skip=e1)            # resblock: + skip, then ReLU
    store(buf1, e2b)

    # e3: stride-2 conv; W-stride is folded into the packed weights (columns at
    # lanes 64:128), H-decimation is a tiny 0/1 selection matmul.
    z_full = conv(3, buf1)                                     # (32, 128)
    z16 = jnp.dot(sel_ref[...], z_full, preferred_element_type=f32)   # (16, 128)

    # --------------------------------- decoder ------------------------------ #
    # Nearest 2x upsample: H via a 0/1 selection matmul, W folded into d1's
    # packed weights (so we can store the H-upsampled z directly).
    up = jnp.dot(uph_ref[...], z16, preferred_element_type=f32)       # (32, 128)
    store(buf0, up)

    d1 = conv(4, buf0)
    store(buf1, d1)
    d2a = conv(5, buf1)
    store(buf0, d2a)
    d2b = conv(6, buf0, skip=d1)            # resblock: + skip, then ReLU
    store(buf1, d2b)
    rec = conv(7, buf1, relu=False)                            # (32, 128), lanes 0:64

    # Lane-dense merged output: recons in lanes 0:64 (all rows), z in rows 0:HZ
    # lanes 64:128 (e3 already wrote z there; its lanes 0:64 are exactly zero).
    zrows = jnp.concatenate(
        [z16.reshape(B, HZ, LANES), jnp.zeros((B, H - HZ, LANES), f32)], axis=1)
    out_ref[...] = rec.reshape(B, H, LANES) + zrows


def _ae_pallas(x_packed, w_all, b_all, sel, uph):
    return pl.pallas_call(
        _ae_kernel,
        out_shape=jax.ShapeDtypeStruct((B, H, LANES), jnp.float32),
        grid=(1,),
        in_specs=[
            pl.BlockSpec((B, H, LANES), lambda i: (0, 0, 0)),      # padded input
            pl.BlockSpec(memory_space=pl.ANY),                     # weights stay in HBM
            pl.BlockSpec((N_CONV, LANES), lambda i: (0, 0)),       # biases
            pl.BlockSpec((B * HZ, B * H), lambda i: (0, 0)),       # sel (16, 32)
            pl.BlockSpec((B * H, B * HZ), lambda i: (0, 0)),       # up_h (32, 16)
        ],
        out_specs=pl.BlockSpec((B, H, LANES), lambda i: (0, 0, 0)),
        scratch_shapes=[
            pltpu.VMEM((B, H + 2, LANES), jnp.float32),            # activation ping
            pltpu.VMEM((B, H + 2, LANES), jnp.float32),            # activation pong
            pltpu.VMEM((N_CONV, 3 * LANES, LANES), jnp.bfloat16),  # prefetched weights
            pltpu.SemaphoreType.DMA((N_CONV,)),
        ],
        compiler_params=pltpu.CompilerParams(
            dimension_semantics=("arbitrary",)),
    )(x_packed, w_all, b_all, sel, uph)


# --------------------------------- forward ---------------------------------- #

def resnet_ae_forward(image_nchw, packed):
    """Mirrors ResNetAE.forward: returns (z flattened per-batch, recons) in NCHW."""
    w_all, b_all = packed
    x = jnp.transpose(image_nchw, (0, 2, 3, 1)).reshape(B, H, W * C_IN)
    x = jnp.pad(x, ((0, 0), (0, 0), (0, LANES - W * C_IN)))    # lane-dense (B, H, 128)
    out = _ae_pallas(x, w_all, b_all, jnp.asarray(_SEL), jnp.asarray(_UPH))
    rec_p = out[:, :, :W * C_IN]                               # (B, 16, 64)
    z_p = out[:, :HZ, Z_OFF:Z_OFF + WZ * C_HID]                # (B, 8, 64)
    # z in NHWC -> match torch.reshape on an NCHW tensor: flatten in (C, H, W) order.
    z_flat = jnp.transpose(z_p.reshape(B, HZ, WZ, C_HID), (0, 3, 1, 2)).reshape(B, -1)
    recons = jnp.transpose(rec_p.reshape(B, H, W, C_IN), (0, 3, 1, 2))
    return z_flat, recons


# ----------------------------------- main ------------------------------------ #

if __name__ == "__main__":
    key = jax.random.PRNGKey(0)
    k_param, k_data = jax.random.split(key)

    params = init_params(k_param)
    packed = pack_params(params)              # one-time lane-space packing (host)
    image = jax.random.normal(k_data, (B, C_IN, H, W), jnp.float32)   # NCHW

    fwd = jax.jit(resnet_ae_forward)
    z_flat, recons = fwd(image, packed)
    jax.block_until_ready((z_flat, recons))

    assert z_flat.shape == (B, C_HID * HZ * WZ), z_flat.shape
    assert recons.shape == (B, C_IN, H, W), recons.shape
    assert bool(jnp.all(jnp.isfinite(z_flat)))
    assert bool(jnp.all(jnp.isfinite(recons)))
    print("KERNEL_OK")
</pallas_src>

<mosaic_0001>
module attributes {stable_mosaic.version = 11 : i64} {
  func.func @_ae_kernel(%arg0: i32, %arg1: memref<2x16x128xf32, #tpu.memory_space<vmem>>, %arg2: memref<8x384x128xbf16, #tpu.memory_space<any>>, %arg3: memref<8x128xf32, #tpu.memory_space<vmem>>, %arg4: memref<16x32xf32, #tpu.memory_space<vmem>>, %arg5: memref<32x16xf32, #tpu.memory_space<vmem>>, %arg6: memref<2x16x128xf32, #tpu.memory_space<vmem>>, %arg7: memref<2x18x128xf32, #tpu.memory_space<vmem>>, %arg8: memref<2x18x128xf32, #tpu.memory_space<vmem>>, %arg9: memref<8x384x128xbf16, #tpu.memory_space<vmem>>, %arg10: memref<8x!tpu.dma_semaphore, #tpu.memory_space<semaphore_mem>>) attributes {dimension_semantics = [#tpu.dimension_semantics<arbitrary>], iteration_bounds = array<i64: 1>, scalar_prefetch = 0 : i64, scratch_operands = 4 : i64, tpu.core_type = #tpu.core_type<tc>, window_params = [{pipeline_mode = #tpu.pipeline_mode<synchronous>, transform_indices = @transform_0, window_bounds = array<i64: 2, 16, 128>}, {}, {pipeline_mode = #tpu.pipeline_mode<synchronous>, transform_indices = @transform_2, window_bounds = array<i64: 8, 128>}, {pipeline_mode = #tpu.pipeline_mode<synchronous>, transform_indices = @transform_3, window_bounds = array<i64: 16, 32>}, {pipeline_mode = #tpu.pipeline_mode<synchronous>, transform_indices = @transform_4, window_bounds = array<i64: 32, 16>}, {pipeline_mode = #tpu.pipeline_mode<synchronous>, transform_indices = @transform_5, window_bounds = array<i64: 2, 16, 128>}]} {
    %c0_i32 = arith.constant 0 : i32
    %c0_i32_0 = arith.constant 0 : i32
    %c0_i32_1 = arith.constant 0 : i32
    %c0_i32_2 = arith.constant 0 : i32
    %c0_i32_3 = arith.constant 0 : i32
    %0 = tpu.memref_slice %arg2[%c0_i32, %c0_i32_2, %c0_i32_3] : memref<8x384x128xbf16, #tpu.memory_space<any>> -> memref<1x384x128xbf16, #tpu.memory_space<any>>
    %1 = tpu.memref_squeeze %0 : memref<1x384x128xbf16, #tpu.memory_space<any>> -> memref<384x128xbf16, #tpu.memory_space<any>>
    %c0_i32_4 = arith.constant 0 : i32
    %c0_i32_5 = arith.constant 0 : i32
    %2 = tpu.memref_slice %arg9[%c0_i32_0, %c0_i32_4, %c0_i32_5] : memref<8x384x128xbf16, #tpu.memory_space<vmem>> -> memref<1x384x128xbf16, #tpu.memory_space<vmem>>
    %3 = tpu.memref_squeeze %2 : memref<1x384x128xbf16, #tpu.memory_space<vmem>> -> memref<384x128xbf16, #tpu.memory_space<vmem>>
    %4 = tpu.memref_slice %arg10[%c0_i32_1] : memref<8x!tpu.dma_semaphore, #tpu.memory_space<semaphore_mem>> -> memref<1x!tpu.dma_semaphore, #tpu.memory_space<semaphore_mem>>
    %5 = tpu.memref_squeeze %4 : memref<1x!tpu.dma_semaphore, #tpu.memory_space<semaphore_mem>> -> memref<!tpu.dma_semaphore, #tpu.memory_space<semaphore_mem>>
    tpu.enqueue_dma source(%1 : memref<384x128xbf16, #tpu.memory_space<any>>) target(%3 : memref<384x128xbf16, #tpu.memory_space<vmem>>) target_semaphore(%5 : memref<!tpu.dma_semaphore, #tpu.memory_space<semaphore_mem>>)
    %c1_i32 = arith.constant 1 : i32
    %c1_i32_6 = arith.constant 1 : i32
    %c1_i32_7 = arith.constant 1 : i32
    %c0_i32_8 = arith.constant 0 : i32
    %c0_i32_9 = arith.constant 0 : i32
    %6 = tpu.memref_slice %arg2[%c1_i32, %c0_i32_8, %c0_i32_9] : memref<8x384x128xbf16, #tpu.memory_space<any>> -> memref<1x384x128xbf16, #tpu.memory_space<any>>
    %7 = tpu.memref_squeeze %6 : memref<1x384x128xbf16, #tpu.memory_space<any>> -> memref<384x128xbf16, #tpu.memory_space<any>>
    %c0_i32_10 = arith.constant 0 : i32
    %c0_i32_11 = arith.constant 0 : i32
    %8 = tpu.memref_slice %arg9[%c1_i32_6, %c0_i32_10, %c0_i32_11] : memref<8x384x128xbf16, #tpu.memory_space<vmem>> -> memref<1x384x128xbf16, #tpu.memory_space<vmem>>
    %9 = tpu.memref_squeeze %8 : memref<1x384x128xbf16, #tpu.memory_space<vmem>> -> memref<384x128xbf16, #tpu.memory_space<vmem>>
    %10 = tpu.memref_slice %arg10[%c1_i32_7] : memref<8x!tpu.dma_semaphore, #tpu.memory_space<semaphore_mem>> -> memref<1x!tpu.dma_semaphore, #tpu.memory_space<semaphore_mem>>
    %11 = tpu.memref_squeeze %10 : memref<1x!tpu.dma_semaphore, #tpu.memory_space<semaphore_mem>> -> memref<!tpu.dma_semaphore, #tpu.memory_space<semaphore_mem>>
    tpu.enqueue_dma source(%7 : memref<384x128xbf16, #tpu.memory_space<any>>) target(%9 : memref<384x128xbf16, #tpu.memory_space<vmem>>) target_semaphore(%11 : memref<!tpu.dma_semaphore, #tpu.memory_space<semaphore_mem>>)
    %c2_i32 = arith.constant 2 : i32
    %c2_i32_12 = arith.constant 2 : i32
    %c2_i32_13 = arith.constant 2 : i32
    %c0_i32_14 = arith.constant 0 : i32
    %c0_i32_15 = arith.constant 0 : i32
    %12 = tpu.memref_slice %arg2[%c2_i32, %c0_i32_14, %c0_i32_15] : memref<8x384x128xbf16, #tpu.memory_space<any>> -> memref<1x384x128xbf16, #tpu.memory_space<any>>
    %13 = tpu.memref_squeeze %12 : memref<1x384x128xbf16, #tpu.memory_space<any>> -> memref<384x128xbf16, #tpu.memory_space<any>>
    %c0_i32_16 = arith.constant 0 : i32
    %c0_i32_17 = arith.constant 0 : i32
    %14 = tpu.memref_slice %arg9[%c2_i32_12, %c0_i32_16, %c0_i32_17] : memref<8x384x128xbf16, #tpu.memory_space<vmem>> -> memref<1x384x128xbf16, #tpu.memory_space<vmem>>
    %15 = tpu.memref_squeeze %14 : memref<1x384x128xbf16, #tpu.memory_space<vmem>> -> memref<384x128xbf16, #tpu.memory_space<vmem>>
    %16 = tpu.memref_slice %arg10[%c2_i32_13] : memref<8x!tpu.dma_semaphore, #tpu.memory_space<semaphore_mem>> -> memref<1x!tpu.dma_semaphore, #tpu.memory_space<semaphore_mem>>
    %17 = tpu.memref_squeeze %16 : memref<1x!tpu.dma_semaphore, #tpu.memory_space<semaphore_mem>> -> memref<!tpu.dma_semaphore, #tpu.memory_space<semaphore_mem>>
    tpu.enqueue_dma source(%13 : memref<384x128xbf16, #tpu.memory_space<any>>) target(%15 : memref<384x128xbf16, #tpu.memory_space<vmem>>) target_semaphore(%17 : memref<!tpu.dma_semaphore, #tpu.memory_space<semaphore_mem>>)
    %c3_i32 = arith.constant 3 : i32
    %c3_i32_18 = arith.constant 3 : i32
    %c3_i32_19 = arith.constant 3 : i32
    %c0_i32_20 = arith.constant 0 : i32
    %c0_i32_21 = arith.constant 0 : i32
    %18 = tpu.memref_slice %arg2[%c3_i32, %c0_i32_20, %c0_i32_21] : memref<8x384x128xbf16, #tpu.memory_space<any>> -> memref<1x384x128xbf16, #tpu.memory_space<any>>
    %19 = tpu.memref_squeeze %18 : memref<1x384x128xbf16, #tpu.memory_space<any>> -> memref<384x128xbf16, #tpu.memory_space<any>>
    %c0_i32_22 = arith.constant 0 : i32
    %c0_i32_23 = arith.constant 0 : i32
    %20 = tpu.memref_slice %arg9[%c3_i32_18, %c0_i32_22, %c0_i32_23] : memref<8x384x128xbf16, #tpu.memory_space<vmem>> -> memref<1x384x128xbf16, #tpu.memory_space<vmem>>
    %21 = tpu.memref_squeeze %20 : memref<1x384x128xbf16, #tpu.memory_space<vmem>> -> memref<384x128xbf16, #tpu.memory_space<vmem>>
    %22 = tpu.memref_slice %arg10[%c3_i32_19] : memref<8x!tpu.dma_semaphore, #tpu.memory_space<semaphore_mem>> -> memref<1x!tpu.dma_semaphore, #tpu.memory_space<semaphore_mem>>
    %23 = tpu.memref_squeeze %22 : memref<1x!tpu.dma_semaphore, #tpu.memory_space<semaphore_mem>> -> memref<!tpu.dma_semaphore, #tpu.memory_space<semaphore_mem>>
    tpu.enqueue_dma source(%19 : memref<384x128xbf16, #tpu.memory_space<any>>) target(%21 : memref<384x128xbf16, #tpu.memory_space<vmem>>) target_semaphore(%23 : memref<!tpu.dma_semaphore, #tpu.memory_space<semaphore_mem>>)
    %c4_i32 = arith.constant 4 : i32
    %c4_i32_24 = arith.constant 4 : i32
    %c4_i32_25 = arith.constant 4 : i32
    %c0_i32_26 = arith.constant 0 : i32
    %c0_i32_27 = arith.constant 0 : i32
    %24 = tpu.memref_slice %arg2[%c4_i32, %c0_i32_26, %c0_i32_27] : memref<8x384x128xbf16, #tpu.memory_space<any>> -> memref<1x384x128xbf16, #tpu.memory_space<any>>
    %25 = tpu.memref_squeeze %24 : memref<1x384x128xbf16, #tpu.memory_space<any>> -> memref<384x128xbf16, #tpu.memory_space<any>>
    %c0_i32_28 = arith.constant 0 : i32
    %c0_i32_29 = arith.constant 0 : i32
    %26 = tpu.memref_slice %arg9[%c4_i32_24, %c0_i32_28, %c0_i32_29] : memref<8x384x128xbf16, #tpu.memory_space<vmem>> -> memref<1x384x128xbf16, #tpu.memory_space<vmem>>
    %27 = tpu.memref_squeeze %26 : memref<1x384x128xbf16, #tpu.memory_space<vmem>> -> memref<384x128xbf16, #tpu.memory_space<vmem>>
    %28 = tpu.memref_slice %arg10[%c4_i32_25] : memref<8x!tpu.dma_semaphore, #tpu.memory_space<semaphore_mem>> -> memref<1x!tpu.dma_semaphore, #tpu.memory_space<semaphore_mem>>
    %29 = tpu.memref_squeeze %28 : memref<1x!tpu.dma_semaphore, #tpu.memory_space<semaphore_mem>> -> memref<!tpu.dma_semaphore, #tpu.memory_space<semaphore_mem>>
    tpu.enqueue_dma source(%25 : memref<384x128xbf16, #tpu.memory_space<any>>) target(%27 : memref<384x128xbf16, #tpu.memory_space<vmem>>) target_semaphore(%29 : memref<!tpu.dma_semaphore, #tpu.memory_space<semaphore_mem>>)
    %c5_i32 = arith.constant 5 : i32
    %c5_i32_30 = arith.constant 5 : i32
    %c5_i32_31 = arith.constant 5 : i32
    %c0_i32_32 = arith.constant 0 : i32
    %c0_i32_33 = arith.constant 0 : i32
    %30 = tpu.memref_slice %arg2[%c5_i32, %c0_i32_32, %c0_i32_33] : memref<8x384x128xbf16, #tpu.memory_space<any>> -> memref<1x384x128xbf16, #tpu.memory_space<any>>
    %31 = tpu.memref_squeeze %30 : memref<1x384x128xbf16, #tpu.memory_space<any>> -> memref<384x128xbf16, #tpu.memory_space<any>>
    %c0_i32_34 = arith.constant 0 : i32
    %c0_i32_35 = arith.constant 0 : i32
    %32 = tpu.memref_slice %arg9[%c5_i32_30, %c0_i32_34, %c0_i32_35] : memref<8x384x128xbf16, #tpu.memory_space<vmem>> -> memref<1x384x128xbf16, #tpu.memory_space<vmem>>
    %33 = tpu.memref_squeeze %32 : memref<1x384x128xbf16, #tpu.memory_space<vmem>> -> memref<384x128xbf16, #tpu.memory_space<vmem>>
    %34 = tpu.memref_slice %arg10[%c5_i32_31] : memref<8x!tpu.dma_semaphore, #tpu.memory_space<semaphore_mem>> -> memref<1x!tpu.dma_semaphore, #tpu.memory_space<semaphore_mem>>
    %35 = tpu.memref_squeeze %34 : memref<1x!tpu.dma_semaphore, #tpu.memory_space<semaphore_mem>> -> memref<!tpu.dma_semaphore, #tpu.memory_space<semaphore_mem>>
    tpu.enqueue_dma source(%31 : memref<384x128xbf16, #tpu.memory_space<any>>) target(%33 : memref<384x128xbf16, #tpu.memory_space<vmem>>) target_semaphore(%35 : memref<!tpu.dma_semaphore, #tpu.memory_space<semaphore_mem>>)
    %c6_i32 = arith.constant 6 : i32
    %c6_i32_36 = arith.constant 6 : i32
    %c6_i32_37 = arith.constant 6 : i32
    %c0_i32_38 = arith.constant 0 : i32
    %c0_i32_39 = arith.constant 0 : i32
    %36 = tpu.memref_slice %arg2[%c6_i32, %c0_i32_38, %c0_i32_39] : memref<8x384x128xbf16, #tpu.memory_space<any>> -> memref<1x384x128xbf16, #tpu.memory_space<any>>
    %37 = tpu.memref_squeeze %36 : memref<1x384x128xbf16, #tpu.memory_space<any>> -> memref<384x128xbf16, #tpu.memory_space<any>>
    %c0_i32_40 = arith.constant 0 : i32
    %c0_i32_41 = arith.constant 0 : i32
    %38 = tpu.memref_slice %arg9[%c6_i32_36, %c0_i32_40, %c0_i32_41] : memref<8x384x128xbf16, #tpu.memory_space<vmem>> -> memref<1x384x128xbf16, #tpu.memory_space<vmem>>
    %39 = tpu.memref_squeeze %38 : memref<1x384x128xbf16, #tpu.memory_space<vmem>> -> memref<384x128xbf16, #tpu.memory_space<vmem>>
    %40 = tpu.memref_slice %arg10[%c6_i32_37] : memref<8x!tpu.dma_semaphore, #tpu.memory_space<semaphore_mem>> -> memref<1x!tpu.dma_semaphore, #tpu.memory_space<semaphore_mem>>
    %41 = tpu.memref_squeeze %40 : memref<1x!tpu.dma_semaphore, #tpu.memory_space<semaphore_mem>> -> memref<!tpu.dma_semaphore, #tpu.memory_space<semaphore_mem>>
    tpu.enqueue_dma source(%37 : memref<384x128xbf16, #tpu.memory_space<any>>) target(%39 : memref<384x128xbf16, #tpu.memory_space<vmem>>) target_semaphore(%41 : memref<!tpu.dma_semaphore, #tpu.memory_space<semaphore_mem>>)
    %c7_i32 = arith.constant 7 : i32
    %c7_i32_42 = arith.constant 7 : i32
    %c7_i32_43 = arith.constant 7 : i32
    %c0_i32_44 = arith.constant 0 : i32
    %c0_i32_45 = arith.constant 0 : i32
    %42 = tpu.memref_slice %arg2[%c7_i32, %c0_i32_44, %c0_i32_45] : memref<8x384x128xbf16, #tpu.memory_space<any>> -> memref<1x384x128xbf16, #tpu.memory_space<any>>
    %43 = tpu.memref_squeeze %42 : memref<1x384x128xbf16, #tpu.memory_space<any>> -> memref<384x128xbf16, #tpu.memory_space<any>>
    %c0_i32_46 = arith.constant 0 : i32
    %c0_i32_47 = arith.constant 0 : i32
    %44 = tpu.memref_slice %arg9[%c7_i32_42, %c0_i32_46, %c0_i32_47] : memref<8x384x128xbf16, #tpu.memory_space<vmem>> -> memref<1x384x128xbf16, #tpu.memory_space<vmem>>
    %45 = tpu.memref_squeeze %44 : memref<1x384x128xbf16, #tpu.memory_space<vmem>> -> memref<384x128xbf16, #tpu.memory_space<vmem>>
    %46 = tpu.memref_slice %arg10[%c7_i32_43] : memref<8x!tpu.dma_semaphore, #tpu.memory_space<semaphore_mem>> -> memref<1x!tpu.dma_semaphore, #tpu.memory_space<semaphore_mem>>
    %47 = tpu.memref_squeeze %46 : memref<1x!tpu.dma_semaphore, #tpu.memory_space<semaphore_mem>> -> memref<!tpu.dma_semaphore, #tpu.memory_space<semaphore_mem>>
    tpu.enqueue_dma source(%43 : memref<384x128xbf16, #tpu.memory_space<any>>) target(%45 : memref<384x128xbf16, #tpu.memory_space<vmem>>) target_semaphore(%47 : memref<!tpu.dma_semaphore, #tpu.memory_space<semaphore_mem>>)
    %cst = arith.constant 0.000000e+00 : f32
    %48 = vector.broadcast %cst : f32 to vector<2x1x128xf32>
    %c0 = arith.constant 0 : index
    %c0_48 = arith.constant 0 : index
    %c0_49 = arith.constant 0 : index
    %49 = vector.load %arg7[%c0, %c0_48, %c0_49] : memref<2x18x128xf32, #tpu.memory_space<vmem>>, vector<2x1x128xf32>
    tpu.vector_store %arg7[%c0, %c0_48, %c0_49], %48 {strides = array<i32>} : memref<2x18x128xf32, #tpu.memory_space<vmem>>, vector<2x1x128xf32>,
    %c0_50 = arith.constant 0 : index
    %c17 = arith.constant 17 : index
    %c0_51 = arith.constant 0 : index
    %50 = vector.load %arg7[%c0_50, %c17, %c0_51] : memref<2x18x128xf32, #tpu.memory_space<vmem>>, vector<2x1x128xf32>
    tpu.vector_store %arg7[%c0_50, %c17, %c0_51], %48 {strides = array<i32>} : memref<2x18x128xf32, #tpu.memory_space<vmem>>, vector<2x1x128xf32>,
    %c0_52 = arith.constant 0 : index
    %c0_53 = arith.constant 0 : index
    %c0_54 = arith.constant 0 : index
    %51 = vector.load %arg8[%c0_52, %c0_53, %c0_54] : memref<2x18x128xf32, #tpu.memory_space<vmem>>, vector<2x1x128xf32>
    tpu.vector_store %arg8[%c0_52, %c0_53, %c0_54], %48 {strides = array<i32>} : memref<2x18x128xf32, #tpu.memory_space<vmem>>, vector<2x1x128xf32>,
    %c0_55 = arith.constant 0 : index
    %c17_56 = arith.constant 17 : index
    %c0_57 = arith.constant 0 : index
    %52 = vector.load %arg8[%c0_55, %c17_56, %c0_57] : memref<2x18x128xf32, #tpu.memory_space<vmem>>, vector<2x1x128xf32>
    tpu.vector_store %arg8[%c0_55, %c17_56, %c0_57], %48 {strides = array<i32>} : memref<2x18x128xf32, #tpu.memory_space<vmem>>, vector<2x1x128xf32>,
    %c0_58 = arith.constant 0 : index
    %c0_59 = arith.constant 0 : index
    %c0_60 = arith.constant 0 : index
    %53 = vector.load %arg1[%c0_58, %c0_59, %c0_60] : memref<2x16x128xf32, #tpu.memory_space<vmem>>, vector<2x16x128xf32>
    %c0_61 = arith.constant 0 : index
    %c1 = arith.constant 1 : index
    %c0_62 = arith.constant 0 : index
    %54 = vector.load %arg7[%c0_61, %c1, %c0_62] : memref<2x18x128xf32, #tpu.memory_space<vmem>>, vector<2x16x128xf32>
    tpu.vector_store %arg7[%c0_61, %c1, %c0_62], %53 {strides = array<i32>} : memref<2x18x128xf32, #tpu.memory_space<vmem>>, vector<2x16x128xf32>,
    %c0_i32_63 = arith.constant 0 : i32
    %c0_i32_64 = arith.constant 0 : i32
    %c0_i32_65 = arith.constant 0 : i32
    %c0_i32_66 = arith.constant 0 : i32
    %c0_i32_67 = arith.constant 0 : i32
    %55 = tpu.memref_slice %arg2[%c0_i32_63, %c0_i32_66, %c0_i32_67] : memref<8x384x128xbf16, #tpu.memory_space<any>> -> memref<1x384x128xbf16, #tpu.memory_space<any>>
    %56 = tpu.memref_squeeze %55 : memref<1x384x128xbf16, #tpu.memory_space<any>> -> memref<384x128xbf16, #tpu.memory_space<any>>
    %c0_i32_68 = arith.constant 0 : i32
    %c0_i32_69 = arith.constant 0 : i32
    %57 = tpu.memref_slice %arg9[%c0_i32_64, %c0_i32_68, %c0_i32_69] : memref<8x384x128xbf16, #tpu.memory_space<vmem>> -> memref<1x384x128xbf16, #tpu.memory_space<vmem>>
    %58 = tpu.memref_squeeze %57 : memref<1x384x128xbf16, #tpu.memory_space<vmem>> -> memref<384x128xbf16, #tpu.memory_space<vmem>>
    %59 = tpu.memref_slice %arg10[%c0_i32_65] : memref<8x!tpu.dma_semaphore, #tpu.memory_space<semaphore_mem>> -> memref<1x!tpu.dma_semaphore, #tpu.memory_space<semaphore_mem>>
    %60 = tpu.memref_squeeze %59 : memref<1x!tpu.dma_semaphore, #tpu.memory_space<semaphore_mem>> -> memref<!tpu.dma_semaphore, #tpu.memory_space<semaphore_mem>>
    tpu.wait_dma2 semaphore(%60 : memref<!tpu.dma_semaphore, #tpu.memory_space<semaphore_mem>>) src(%56 : memref<384x128xbf16, #tpu.memory_space<any>>) dst(%58 : memref<384x128xbf16, #tpu.memory_space<vmem>>)
    %c0_70 = arith.constant 0 : index
    %c0_71 = arith.constant 0 : index
    %c0_72 = arith.constant 0 : index
    %61 = vector.load %arg7[%c0_70, %c0_71, %c0_72] : memref<2x18x128xf32, #tpu.memory_space<vmem>>, vector<2x16x128xf32>
    %c0_73 = arith.constant 0 : index
    %c1_74 = arith.constant 1 : index
    %c0_75 = arith.constant 0 : index
    %62 = vector.load %arg7[%c0_73, %c1_74, %c0_75] : memref<2x18x128xf32, #tpu.memory_space<vmem>>, vector<2x16x128xf32>
    %c0_76 = arith.constant 0 : index
    %c2 = arith.constant 2 : index
    %c0_77 = arith.constant 0 : index
    %63 = vector.load %arg7[%c0_76, %c2, %c0_77] : memref<2x18x128xf32, #tpu.memory_space<vmem>>, vector<2x16x128xf32>
    %64 = tpu.concatenate %61, %62, %63 in 2 : vector<2x16x128xf32>, vector<2x16x128xf32>, vector<2x16x128xf32> -> vector<2x16x384xf32>
    %65 = vector.shape_cast %64 : vector<2x16x384xf32> to vector<32x384xf32>
    %66 = arith.truncf %65 : vector<32x384xf32> to vector<32x384xbf16>
    %c0_78 = arith.constant 0 : index
    %c0_79 = arith.constant 0 : index
    %c0_80 = arith.constant 0 : index
    %67 = vector.load %arg9[%c0_78, %c0_79, %c0_80] : memref<8x384x128xbf16, #tpu.memory_space<vmem>>, vector<1x384x128xbf16>
    %68 = vector.shape_cast %67 : vector<1x384x128xbf16> to vector<384x128xbf16>
    %cst_81 = arith.constant dense<0.000000e+00> : vector<32x128xf32>
    %69 = tpu.matmul %66, %68, %cst_81 {dimension_numbers = #tpu.dot_dimension_numbers<[1], [0], [0], [1], [0, 0, 1, 1], [], []>} : vector<32x384xbf16>, vector<384x128xbf16>, vector<32x128xf32> -> vector<32x128xf32>
    %c0_82 = arith.constant 0 : index
    %c0_83 = arith.constant 0 : index
    %70 = vector.load %arg3[%c0_82, %c0_83] : memref<8x128xf32, #tpu.memory_space<vmem>>, vector<1x128xf32>
    %71 = vector.broadcast %70 : vector<1x128xf32> to vector<32x128xf32>
    %72 = arith.addf %69, %71 : vector<32x128xf32>
    %cst_84 = arith.constant 0.000000e+00 : f32
    %73 = vector.broadcast %cst_84 : f32 to vector<32x128xf32>
    %74 = arith.maximumf %72, %73 : vector<32x128xf32>
    %75 = vector.shape_cast %74 : vector<32x128xf32> to vector<2x16x128xf32>
    %c0_85 = arith.constant 0 : index
    %c1_86 = arith.constant 1 : index
    %c0_87 = arith.constant 0 : index
    %76 = vector.load %arg8[%c0_85, %c1_86, %c0_87] : memref<2x18x128xf32, #tpu.memory_space<vmem>>, vector<2x16x128xf32>
    tpu.vector_store %arg8[%c0_85, %c1_86, %c0_87], %75 {strides = array<i32>} : memref<2x18x128xf32, #tpu.memory_space<vmem>>, vector<2x16x128xf32>,
    %c1_i32_88 = arith.constant 1 : i32
    %c1_i32_89 = arith.constant 1 : i32
    %c1_i32_90 = arith.constant 1 : i32
    %c0_i32_91 = arith.constant 0 : i32
    %c0_i32_92 = arith.constant 0 : i32
    %77 = tpu.memref_slice %arg2[%c1_i32_88, %c0_i32_91, %c0_i32_92] : memref<8x384x128xbf16, #tpu.memory_space<any>> -> memref<1x384x128xbf16, #tpu.memory_space<any>>
    %78 = tpu.memref_squeeze %77 : memref<1x384x128xbf16, #tpu.memory_space<any>> -> memref<384x128xbf16, #tpu.memory_space<any>>
    %c0_i32_93 = arith.constant 0 : i32
    %c0_i32_94 = arith.constant 0 : i32
    %79 = tpu.memref_slice %arg9[%c1_i32_89, %c0_i32_93, %c0_i32_94] : memref<8x384x128xbf16, #tpu.memory_space<vmem>> -> memref<1x384x128xbf16, #tpu.memory_space<vmem>>
    %80 = tpu.memref_squeeze %79 : memref<1x384x128xbf16, #tpu.memory_space<vmem>> -> memref<384x128xbf16, #tpu.memory_space<vmem>>
    %81 = tpu.memref_slice %arg10[%c1_i32_90] : memref<8x!tpu.dma_semaphore, #tpu.memory_space<semaphore_mem>> -> memref<1x!tpu.dma_semaphore, #tpu.memory_space<semaphore_mem>>
    %82 = tpu.memref_squeeze %81 : memref<1x!tpu.dma_semaphore, #tpu.memory_space<semaphore_mem>> -> memref<!tpu.dma_semaphore, #tpu.memory_space<semaphore_mem>>
    tpu.wait_dma2 semaphore(%82 : memref<!tpu.dma_semaphore, #tpu.memory_space<semaphore_mem>>) src(%78 : memref<384x128xbf16, #tpu.memory_space<any>>) dst(%80 : memref<384x128xbf16, #tpu.memory_space<vmem>>)
    %c0_95 = arith.constant 0 : index
    %c0_96 = arith.constant 0 : index
    %c0_97 = arith.constant 0 : index
    %83 = vector.load %arg8[%c0_95, %c0_96, %c0_97] : memref<2x18x128xf32, #tpu.memory_space<vmem>>, vector<2x16x128xf32>
    %c0_98 = arith.constant 0 : index
    %c1_99 = arith.constant 1 : index
    %c0_100 = arith.constant 0 : index
    %84 = vector.load %arg8[%c0_98, %c1_99, %c0_100] : memref<2x18x128xf32, #tpu.memory_space<vmem>>, vector<2x16x128xf32>
    %c0_101 = arith.constant 0 : index
    %c2_102 = arith.constant 2 : index
    %c0_103 = arith.constant 0 : index
    %85 = vector.load %arg8[%c0_101, %c2_102, %c0_103] : memref<2x18x128xf32, #tpu.memory_space<vmem>>, vector<2x16x128xf32>
    %86 = tpu.concatenate %83, %84, %85 in 2 : vector<2x16x128xf32>, vector<2x16x128xf32>, vector<2x16x128xf32> -> vector<2x16x384xf32>
    %87 = vector.shape_cast %86 : vector<2x16x384xf32> to vector<32x384xf32>
    %88 = arith.truncf %87 : vector<32x384xf32> to vector<32x384xbf16>
    %c1_104 = arith.constant 1 : index
    %c0_105 = arith.constant 0 : index
    %c0_106 = arith.constant 0 : index
    %89 = vector.load %arg9[%c1_104, %c0_105, %c0_106] : memref<8x384x128xbf16, #tpu.memory_space<vmem>>, vector<1x384x128xbf16>
    %90 = vector.shape_cast %89 : vector<1x384x128xbf16> to vector<384x128xbf16>
    %cst_107 = arith.constant dense<0.000000e+00> : vector<32x128xf32>
    %91 = tpu.matmul %88, %90, %cst_107 {dimension_numbers = #tpu.dot_dimension_numbers<[1], [0], [0], [1], [0, 0, 1, 1], [], []>} : vector<32x384xbf16>, vector<384x128xbf16>, vector<32x128xf32> -> vector<32x128xf32>
    %c1_108 = arith.constant 1 : index
    %c0_109 = arith.constant 0 : index
    %92 = vector.load %arg3[%c1_108, %c0_109] : memref<8x128xf32, #tpu.memory_space<vmem>>, vector<1x128xf32>
    %93 = vector.broadcast %92 : vector<1x128xf32> to vector<32x128xf32>
    %94 = arith.addf %91, %93 : vector<32x128xf32>
    %cst_110 = arith.constant 0.000000e+00 : f32
    %95 = vector.broadcast %cst_110 : f32 to vector<32x128xf32>
    %96 = arith.maximumf %94, %95 : vector<32x128xf32>
    %97 = vector.shape_cast %96 : vector<32x128xf32> to vector<2x16x128xf32>
    %c0_111 = arith.constant 0 : index
    %c1_112 = arith.constant 1 : index
    %c0_113 = arith.constant 0 : index
    %98 = vector.load %arg7[%c0_111, %c1_112, %c0_113] : memref<2x18x128xf32, #tpu.memory_space<vmem>>, vector<2x16x128xf32>
    tpu.vector_store %arg7[%c0_111, %c1_112, %c0_113], %97 {strides = array<i32>} : memref<2x18x128xf32, #tpu.memory_space<vmem>>, vector<2x16x128xf32>,
    %c2_i32_114 = arith.constant 2 : i32
    %c2_i32_115 = arith.constant 2 : i32
    %c2_i32_116 = arith.constant 2 : i32
    %c0_i32_117 = arith.constant 0 : i32
    %c0_i32_118 = arith.constant 0 : i32
    %99 = tpu.memref_slice %arg2[%c2_i32_114, %c0_i32_117, %c0_i32_118] : memref<8x384x128xbf16, #tpu.memory_space<any>> -> memref<1x384x128xbf16, #tpu.memory_space<any>>
    %100 = tpu.memref_squeeze %99 : memref<1x384x128xbf16, #tpu.memory_space<any>> -> memref<384x128xbf16, #tpu.memory_space<any>>
    %c0_i32_119 = arith.constant 0 : i32
    %c0_i32_120 = arith.constant 0 : i32
    %101 = tpu.memref_slice %arg9[%c2_i32_115, %c0_i32_119, %c0_i32_120] : memref<8x384x128xbf16, #tpu.memory_space<vmem>> -> memref<1x384x128xbf16, #tpu.memory_space<vmem>>
    %102 = tpu.memref_squeeze %101 : memref<1x384x128xbf16, #tpu.memory_space<vmem>> -> memref<384x128xbf16, #tpu.memory_space<vmem>>
    %103 = tpu.memref_slice %arg10[%c2_i32_116] : memref<8x!tpu.dma_semaphore, #tpu.memory_space<semaphore_mem>> -> memref<1x!tpu.dma_semaphore, #tpu.memory_space<semaphore_mem>>
    %104 = tpu.memref_squeeze %103 : memref<1x!tpu.dma_semaphore, #tpu.memory_space<semaphore_mem>> -> memref<!tpu.dma_semaphore, #tpu.memory_space<semaphore_mem>>
    tpu.wait_dma2 semaphore(%104 : memref<!tpu.dma_semaphore, #tpu.memory_space<semaphore_mem>>) src(%100 : memref<384x128xbf16, #tpu.memory_space<any>>) dst(%102 : memref<384x128xbf16, #tpu.memory_space<vmem>>)
    %c0_121 = arith.constant 0 : index
    %c0_122 = arith.constant 0 : index
    %c0_123 = arith.constant 0 : index
    %105 = vector.load %arg7[%c0_121, %c0_122, %c0_123] : memref<2x18x128xf32, #tpu.memory_space<vmem>>, vector<2x16x128xf32>
    %c0_124 = arith.constant 0 : index
    %c1_125 = arith.constant 1 : index
    %c0_126 = arith.constant 0 : index
    %106 = vector.load %arg7[%c0_124, %c1_125, %c0_126] : memref<2x18x128xf32, #tpu.memory_space<vmem>>, vector<2x16x128xf32>
    %c0_127 = arith.constant 0 : index
    %c2_128 = arith.constant 2 : index
    %c0_129 = arith.constant 0 : index
    %107 = vector.load %arg7[%c0_127, %c2_128, %c0_129] : memref<2x18x128xf32, #tpu.memory_space<vmem>>, vector<2x16x128xf32>
    %108 = tpu.concatenate %105, %106, %107 in 2 : vector<2x16x128xf32>, vector<2x16x128xf32>, vector<2x16x128xf32> -> vector<2x16x384xf32>
    %109 = vector.shape_cast %108 : vector<2x16x384xf32> to vector<32x384xf32>
    %110 = arith.truncf %109 : vector<32x384xf32> to vector<32x384xbf16>
    %c2_130 = arith.constant 2 : index
    %c0_131 = arith.constant 0 : index
    %c0_132 = arith.constant 0 : index
    %111 = vector.load %arg9[%c2_130, %c0_131, %c0_132] : memref<8x384x128xbf16, #tpu.memory_space<vmem>>, vector<1x384x128xbf16>
    %112 = vector.shape_cast %111 : vector<1x384x128xbf16> to vector<384x128xbf16>
    %cst_133 = arith.constant dense<0.000000e+00> : vector<32x128xf32>
    %113 = tpu.matmul %110, %112, %cst_133 {dimension_numbers = #tpu.dot_dimension_numbers<[1], [0], [0], [1], [0, 0, 1, 1], [], []>} : vector<32x384xbf16>, vector<384x128xbf16>, vector<32x128xf32> -> vector<32x128xf32>
    %c2_134 = arith.constant 2 : index
    %c0_135 = arith.constant 0 : index
    %114 = vector.load %arg3[%c2_134, %c0_135] : memref<8x128xf32, #tpu.memory_space<vmem>>, vector<1x128xf32>
    %115 = vector.broadcast %114 : vector<1x128xf32> to vector<32x128xf32>
    %116 = arith.addf %113, %115 : vector<32x128xf32>
    %117 = arith.addf %116, %74 : vector<32x128xf32>
    %cst_136 = arith.constant 0.000000e+00 : f32
    %118 = vector.broadcast %cst_136 : f32 to vector<32x128xf32>
    %119 = arith.maximumf %117, %118 : vector<32x128xf32>
    %120 = vector.shape_cast %119 : vector<32x128xf32> to vector<2x16x128xf32>
    %c0_137 = arith.constant 0 : index
    %c1_138 = arith.constant 1 : index
    %c0_139 = arith.constant 0 : index
    %121 = vector.load %arg8[%c0_137, %c1_138, %c0_139] : memref<2x18x128xf32, #tpu.memory_space<vmem>>, vector<2x16x128xf32>
    tpu.vector_store %arg8[%c0_137, %c1_138, %c0_139], %120 {strides = array<i32>} : memref<2x18x128xf32, #tpu.memory_space<vmem>>, vector<2x16x128xf32>,
    %c3_i32_140 = arith.constant 3 : i32
    %c3_i32_141 = arith.constant 3 : i32
    %c3_i32_142 = arith.constant 3 : i32
    %c0_i32_143 = arith.constant 0 : i32
    %c0_i32_144 = arith.constant 0 : i32
    %122 = tpu.memref_slice %arg2[%c3_i32_140, %c0_i32_143, %c0_i32_144] : memref<8x384x128xbf16, #tpu.memory_space<any>> -> memref<1x384x128xbf16, #tpu.memory_space<any>>
    %123 = tpu.memref_squeeze %122 : memref<1x384x128xbf16, #tpu.memory_space<any>> -> memref<384x128xbf16, #tpu.memory_space<any>>
    %c0_i32_145 = arith.constant 0 : i32
    %c0_i32_146 = arith.constant 0 : i32
    %124 = tpu.memref_slice %arg9[%c3_i32_141, %c0_i32_145, %c0_i32_146] : memref<8x384x128xbf16, #tpu.memory_space<vmem>> -> memref<1x384x128xbf16, #tpu.memory_space<vmem>>
    %125 = tpu.memref_squeeze %124 : memref<1x384x128xbf16, #tpu.memory_space<vmem>> -> memref<384x128xbf16, #tpu.memory_space<vmem>>
    %126 = tpu.memref_slice %arg10[%c3_i32_142] : memref<8x!tpu.dma_semaphore, #tpu.memory_space<semaphore_mem>> -> memref<1x!tpu.dma_semaphore, #tpu.memory_space<semaphore_mem>>
    %127 = tpu.memref_squeeze %126 : memref<1x!tpu.dma_semaphore, #tpu.memory_space<semaphore_mem>> -> memref<!tpu.dma_semaphore, #tpu.memory_space<semaphore_mem>>
    tpu.wait_dma2 semaphore(%127 : memref<!tpu.dma_semaphore, #tpu.memory_space<semaphore_mem>>) src(%123 : memref<384x128xbf16, #tpu.memory_space<any>>) dst(%125 : memref<384x128xbf16, #tpu.memory_space<vmem>>)
    %c0_147 = arith.constant 0 : index
    %c0_148 = arith.constant 0 : index
    %c0_149 = arith.constant 0 : index
    %128 = vector.load %arg8[%c0_147, %c0_148, %c0_149] : memref<2x18x128xf32, #tpu.memory_space<vmem>>, vector<2x16x128xf32>
    %c0_150 = arith.constant 0 : index
    %c1_151 = arith.constant 1 : index
    %c0_152 = arith.constant 0 : index
    %129 = vector.load %arg8[%c0_150, %c1_151, %c0_152] : memref<2x18x128xf32, #tpu.memory_space<vmem>>, vector<2x16x128xf32>
    %c0_153 = arith.constant 0 : index
    %c2_154 = arith.constant 2 : index
    %c0_155 = arith.constant 0 : index
    %130 = vector.load %arg8[%c0_153, %c2_154, %c0_155] : memref<2x18x128xf32, #tpu.memory_space<vmem>>, vector<2x16x128xf32>
    %131 = tpu.concatenate %128, %129, %130 in 2 : vector<2x16x128xf32>, vector<2x16x128xf32>, vector<2x16x128xf32> -> vector<2x16x384xf32>
    %132 = vector.shape_cast %131 : vector<2x16x384xf32> to vector<32x384xf32>
    %133 = arith.truncf %132 : vector<32x384xf32> to vector<32x384xbf16>
    %c3 = arith.constant 3 : index
    %c0_156 = arith.constant 0 : index
    %c0_157 = arith.constant 0 : index
    %134 = vector.load %arg9[%c3, %c0_156, %c0_157] : memref<8x384x128xbf16, #tpu.memory_space<vmem>>, vector<1x384x128xbf16>
    %135 = vector.shape_cast %134 : vector<1x384x128xbf16> to vector<384x128xbf16>
    %cst_158 = arith.constant dense<0.000000e+00> : vector<32x128xf32>
    %136 = tpu.matmul %133, %135, %cst_158 {dimension_numbers = #tpu.dot_dimension_numbers<[1], [0], [0], [1], [0, 0, 1, 1], [], []>} : vector<32x384xbf16>, vector<384x128xbf16>, vector<32x128xf32> -> vector<32x128xf32>
    %c3_159 = arith.constant 3 : index
    %c0_160 = arith.constant 0 : index
    %137 = vector.load %arg3[%c3_159, %c0_160] : memref<8x128xf32, #tpu.memory_space<vmem>>, vector<1x128xf32>
    %138 = vector.broadcast %137 : vector<1x128xf32> to vector<32x128xf32>
    %139 = arith.addf %136, %138 : vector<32x128xf32>
    %cst_161 = arith.constant 0.000000e+00 : f32
    %140 = vector.broadcast %cst_161 : f32 to vector<32x128xf32>
    %141 = arith.maximumf %139, %140 : vector<32x128xf32>
    %c0_162 = arith.constant 0 : index
    %c0_163 = arith.constant 0 : index
    %142 = vector.load %arg4[%c0_162, %c0_163] : memref<16x32xf32, #tpu.memory_space<vmem>>, vector<16x32xf32>
    %cst_164 = arith.constant dense<0.000000e+00> : vector<16x128xf32>
    %143 = tpu.matmul %142, %141, %cst_164 {dimension_numbers = #tpu.dot_dimension_numbers<[1], [0], [0], [1], [0, 0, 1, 1], [], []>} : vector<16x32xf32>, vector<32x128xf32>, vector<16x128xf32> -> vector<16x128xf32>
    %c0_165 = arith.constant 0 : index
    %c0_166 = arith.constant 0 : index
    %144 = vector.load %arg5[%c0_165, %c0_166] : memref<32x16xf32, #tpu.memory_space<vmem>>, vector<32x16xf32>
    %cst_167 = arith.constant dense<0.000000e+00> : vector<32x128xf32>
    %145 = tpu.matmul %144, %143, %cst_167 {dimension_numbers = #tpu.dot_dimension_numbers<[1], [0], [0], [1], [0, 0, 1, 1], [], []>} : vector<32x16xf32>, vector<16x128xf32>, vector<32x128xf32> -> vector<32x128xf32>
    %146 = vector.shape_cast %145 : vector<32x128xf32> to vector<2x16x128xf32>
    %c0_168 = arith.constant 0 : index
    %c1_169 = arith.constant 1 : index
    %c0_170 = arith.constant 0 : index
    %147 = vector.load %arg7[%c0_168, %c1_169, %c0_170] : memref<2x18x128xf32, #tpu.memory_space<vmem>>, vector<2x16x128xf32>
    tpu.vector_store %arg7[%c0_168, %c1_169, %c0_170], %146 {strides = array<i32>} : memref<2x18x128xf32, #tpu.memory_space<vmem>>, vector<2x16x128xf32>,
    %c4_i32_171 = arith.constant 4 : i32
    %c4_i32_172 = arith.constant 4 : i32
    %c4_i32_173 = arith.constant 4 : i32
    %c0_i32_174 = arith.constant 0 : i32
    %c0_i32_175 = arith.constant 0 : i32
    %148 = tpu.memref_slice %arg2[%c4_i32_171, %c0_i32_174, %c0_i32_175] : memref<8x384x128xbf16, #tpu.memory_space<any>> -> memref<1x384x128xbf16, #tpu.memory_space<any>>
    %149 = tpu.memref_squeeze %148 : memref<1x384x128xbf16, #tpu.memory_space<any>> -> memref<384x128xbf16, #tpu.memory_space<any>>
    %c0_i32_176 = arith.constant 0 : i32
    %c0_i32_177 = arith.constant 0 : i32
    %150 = tpu.memref_slice %arg9[%c4_i32_172, %c0_i32_176, %c0_i32_177] : memref<8x384x128xbf16, #tpu.memory_space<vmem>> -> memref<1x384x128xbf16, #tpu.memory_space<vmem>>
    %151 = tpu.memref_squeeze %150 : memref<1x384x128xbf16, #tpu.memory_space<vmem>> -> memref<384x128xbf16, #tpu.memory_space<vmem>>
    %152 = tpu.memref_slice %arg10[%c4_i32_173] : memref<8x!tpu.dma_semaphore, #tpu.memory_space<semaphore_mem>> -> memref<1x!tpu.dma_semaphore, #tpu.memory_space<semaphore_mem>>
    %153 = tpu.memref_squeeze %152 : memref<1x!tpu.dma_semaphore, #tpu.memory_space<semaphore_mem>> -> memref<!tpu.dma_semaphore, #tpu.memory_space<semaphore_mem>>
    tpu.wait_dma2 semaphore(%153 : memref<!tpu.dma_semaphore, #tpu.memory_space<semaphore_mem>>) src(%149 : memref<384x128xbf16, #tpu.memory_space<any>>) dst(%151 : memref<384x128xbf16, #tpu.memory_space<vmem>>)
    %c0_178 = arith.constant 0 : index
    %c0_179 = arith.constant 0 : index
    %c0_180 = arith.constant 0 : index
    %154 = vector.load %arg7[%c0_178, %c0_179, %c0_180] : memref<2x18x128xf32, #tpu.memory_space<vmem>>, vector<2x16x128xf32>
    %c0_181 = arith.constant 0 : index
    %c1_182 = arith.constant 1 : index
    %c0_183 = arith.constant 0 : index
    %155 = vector.load %arg7[%c0_181, %c1_182, %c0_183] : memref<2x18x128xf32, #tpu.memory_space<vmem>>, vector<2x16x128xf32>
    %c0_184 = arith.constant 0 : index
    %c2_185 = arith.constant 2 : index
    %c0_186 = arith.constant 0 : index
    %156 = vector.load %arg7[%c0_184, %c2_185, %c0_186] : memref<2x18x128xf32, #tpu.memory_space<vmem>>, vector<2x16x128xf32>
    %157 = tpu.concatenate %154, %155, %156 in 2 : vector<2x16x128xf32>, vector<2x16x128xf32>, vector<2x16x128xf32> -> vector<2x16x384xf32>
    %158 = vector.shape_cast %157 : vector<2x16x384xf32> to vector<32x384xf32>
    %159 = arith.truncf %158 : vector<32x384xf32> to vector<32x384xbf16>
    %c4 = arith.constant 4 : index
    %c0_187 = arith.constant 0 : index
    %c0_188 = arith.constant 0 : index
    %160 = vector.load %arg9[%c4, %c0_187, %c0_188] : memref<8x384x128xbf16, #tpu.memory_space<vmem>>, vector<1x384x128xbf16>
    %161 = vector.shape_cast %160 : vector<1x384x128xbf16> to vector<384x128xbf16>
    %cst_189 = arith.constant dense<0.000000e+00> : vector<32x128xf32>
    %162 = tpu.matmul %159, %161, %cst_189 {dimension_numbers = #tpu.dot_dimension_numbers<[1], [0], [0], [1], [0, 0, 1, 1], [], []>} : vector<32x384xbf16>, vector<384x128xbf16>, vector<32x128xf32> -> vector<32x128xf32>
    %c4_190 = arith.constant 4 : index
    %c0_191 = arith.constant 0 : index
    %163 = vector.load %arg3[%c4_190, %c0_191] : memref<8x128xf32, #tpu.memory_space<vmem>>, vector<1x128xf32>
    %164 = vector.broadcast %163 : vector<1x128xf32> to vector<32x128xf32>
    %165 = arith.addf %162, %164 : vector<32x128xf32>
    %cst_192 = arith.constant 0.000000e+00 : f32
    %166 = vector.broadcast %cst_192 : f32 to vector<32x128xf32>
    %167 = arith.maximumf %165, %166 : vector<32x128xf32>
    %168 = vector.shape_cast %167 : vector<32x128xf32> to vector<2x16x128xf32>
    %c0_193 = arith.constant 0 : index
    %c1_194 = arith.constant 1 : index
    %c0_195 = arith.constant 0 : index
    %169 = vector.load %arg8[%c0_193, %c1_194, %c0_195] : memref<2x18x128xf32, #tpu.memory_space<vmem>>, vector<2x16x128xf32>
    tpu.vector_store %arg8[%c0_193, %c1_194, %c0_195], %168 {strides = array<i32>} : memref<2x18x128xf32, #tpu.memory_space<vmem>>, vector<2x16x128xf32>,
    %c5_i32_196 = arith.constant 5 : i32
    %c5_i32_197 = arith.constant 5 : i32
    %c5_i32_198 = arith.constant 5 : i32
    %c0_i32_199 = arith.constant 0 : i32
    %c0_i32_200 = arith.constant 0 : i32
    %170 = tpu.memref_slice %arg2[%c5_i32_196, %c0_i32_199, %c0_i32_200] : memref<8x384x128xbf16, #tpu.memory_space<any>> -> memref<1x384x128xbf16, #tpu.memory_space<any>>
    %171 = tpu.memref_squeeze %170 : memref<1x384x128xbf16, #tpu.memory_space<any>> -> memref<384x128xbf16, #tpu.memory_space<any>>
    %c0_i32_201 = arith.constant 0 : i32
    %c0_i32_202 = arith.constant 0 : i32
    %172 = tpu.memref_slice %arg9[%c5_i32_197, %c0_i32_201, %c0_i32_202] : memref<8x384x128xbf16, #tpu.memory_space<vmem>> -> memref<1x384x128xbf16, #tpu.memory_space<vmem>>
    %173 = tpu.memref_squeeze %172 : memref<1x384x128xbf16, #tpu.memory_space<vmem>> -> memref<384x128xbf16, #tpu.memory_space<vmem>>
    %174 = tpu.memref_slice %arg10[%c5_i32_198] : memref<8x!tpu.dma_semaphore, #tpu.memory_space<semaphore_mem>> -> memref<1x!tpu.dma_semaphore, #tpu.memory_space<semaphore_mem>>
    %175 = tpu.memref_squeeze %174 : memref<1x!tpu.dma_semaphore, #tpu.memory_space<semaphore_mem>> -> memref<!tpu.dma_semaphore, #tpu.memory_space<semaphore_mem>>
    tpu.wait_dma2 semaphore(%175 : memref<!tpu.dma_semaphore, #tpu.memory_space<semaphore_mem>>) src(%171 : memref<384x128xbf16, #tpu.memory_space<any>>) dst(%173 : memref<384x128xbf16, #tpu.memory_space<vmem>>)
    %c0_203 = arith.constant 0 : index
    %c0_204 = arith.constant 0 : index
    %c0_205 = arith.constant 0 : index
    %176 = vector.load %arg8[%c0_203, %c0_204, %c0_205] : memref<2x18x128xf32, #tpu.memory_space<vmem>>, vector<2x16x128xf32>
    %c0_206 = arith.constant 0 : index
    %c1_207 = arith.constant 1 : index
    %c0_208 = arith.constant 0 : index
    %177 = vector.load %arg8[%c0_206, %c1_207, %c0_208] : memref<2x18x128xf32, #tpu.memory_space<vmem>>, vector<2x16x128xf32>
    %c0_209 = arith.constant 0 : index
    %c2_210 = arith.constant 2 : index
    %c0_211 = arith.constant 0 : index
    %178 = vector.load %arg8[%c0_209, %c2_210, %c0_211] : memref<2x18x128xf32, #tpu.memory_space<vmem>>, vector<2x16x128xf32>
    %179 = tpu.concatenate %176, %177, %178 in 2 : vector<2x16x128xf32>, vector<2x16x128xf32>, vector<2x16x128xf32> -> vector<2x16x384xf32>
    %180 = vector.shape_cast %179 : vector<2x16x384xf32> to vector<32x384xf32>
    %181 = arith.truncf %180 : vector<32x384xf32> to vector<32x384xbf16>
    %c5 = arith.constant 5 : index
    %c0_212 = arith.constant 0 : index
    %c0_213 = arith.constant 0 : index
    %182 = vector.load %arg9[%c5, %c0_212, %c0_213] : memref<8x384x128xbf16, #tpu.memory_space<vmem>>, vector<1x384x128xbf16>
    %183 = vector.shape_cast %182 : vector<1x384x128xbf16> to vector<384x128xbf16>
    %cst_214 = arith.constant dense<0.000000e+00> : vector<32x128xf32>
    %184 = tpu.matmul %181, %183, %cst_214 {dimension_numbers = #tpu.dot_dimension_numbers<[1], [0], [0], [1], [0, 0, 1, 1], [], []>} : vector<32x384xbf16>, vector<384x128xbf16>, vector<32x128xf32> -> vector<32x128xf32>
    %c5_215 = arith.constant 5 : index
    %c0_216 = arith.constant 0 : index
    %185 = vector.load %arg3[%c5_215, %c0_216] : memref<8x128xf32, #tpu.memory_space<vmem>>, vector<1x128xf32>
    %186 = vector.broadcast %185 : vector<1x128xf32> to vector<32x128xf32>
    %187 = arith.addf %184, %186 : vector<32x128xf32>
    %cst_217 = arith.constant 0.000000e+00 : f32
    %188 = vector.broadcast %cst_217 : f32 to vector<32x128xf32>
    %189 = arith.maximumf %187, %188 : vector<32x128xf32>
    %190 = vector.shape_cast %189 : vector<32x128xf32> to vector<2x16x128xf32>
    %c0_218 = arith.constant 0 : index
    %c1_219 = arith.constant 1 : index
    %c0_220 = arith.constant 0 : index
    %191 = vector.load %arg7[%c0_218, %c1_219, %c0_220] : memref<2x18x128xf32, #tpu.memory_space<vmem>>, vector<2x16x128xf32>
    tpu.vector_store %arg7[%c0_218, %c1_219, %c0_220], %190 {strides = array<i32>} : memref<2x18x128xf32, #tpu.memory_space<vmem>>, vector<2x16x128xf32>,
    %c6_i32_221 = arith.constant 6 : i32
    %c6_i32_222 = arith.constant 6 : i32
    %c6_i32_223 = arith.constant 6 : i32
    %c0_i32_224 = arith.constant 0 : i32
    %c0_i32_225 = arith.constant 0 : i32
    %192 = tpu.memref_slice %arg2[%c6_i32_221, %c0_i32_224, %c0_i32_225] : memref<8x384x128xbf16, #tpu.memory_space<any>> -> memref<1x384x128xbf16, #tpu.memory_space<any>>
    %193 = tpu.memref_squeeze %192 : memref<1x384x128xbf16, #tpu.memory_space<any>> -> memref<384x128xbf16, #tpu.memory_space<any>>
    %c0_i32_226 = arith.constant 0 : i32
    %c0_i32_227 = arith.constant 0 : i32
    %194 = tpu.memref_slice %arg9[%c6_i32_222, %c0_i32_226, %c0_i32_227] : memref<8x384x128xbf16, #tpu.memory_space<vmem>> -> memref<1x384x128xbf16, #tpu.memory_space<vmem>>
    %195 = tpu.memref_squeeze %194 : memref<1x384x128xbf16, #tpu.memory_space<vmem>> -> memref<384x128xbf16, #tpu.memory_space<vmem>>
    %196 = tpu.memref_slice %arg10[%c6_i32_223] : memref<8x!tpu.dma_semaphore, #tpu.memory_space<semaphore_mem>> -> memref<1x!tpu.dma_semaphore, #tpu.memory_space<semaphore_mem>>
    %197 = tpu.memref_squeeze %196 : memref<1x!tpu.dma_semaphore, #tpu.memory_space<semaphore_mem>> -> memref<!tpu.dma_semaphore, #tpu.memory_space<semaphore_mem>>
    tpu.wait_dma2 semaphore(%197 : memref<!tpu.dma_semaphore, #tpu.memory_space<semaphore_mem>>) src(%193 : memref<384x128xbf16, #tpu.memory_space<any>>) dst(%195 : memref<384x128xbf16, #tpu.memory_space<vmem>>)
    %c0_228 = arith.constant 0 : index
    %c0_229 = arith.constant 0 : index
    %c0_230 = arith.constant 0 : index
    %198 = vector.load %arg7[%c0_228, %c0_229, %c0_230] : memref<2x18x128xf32, #tpu.memory_space<vmem>>, vector<2x16x128xf32>
    %c0_231 = arith.constant 0 : index
    %c1_232 = arith.constant 1 : index
    %c0_233 = arith.constant 0 : index
    %199 = vector.load %arg7[%c0_231, %c1_232, %c0_233] : memref<2x18x128xf32, #tpu.memory_space<vmem>>, vector<2x16x128xf32>
    %c0_234 = arith.constant 0 : index
    %c2_235 = arith.constant 2 : index
    %c0_236 = arith.constant 0 : index
    %200 = vector.load %arg7[%c0_234, %c2_235, %c0_236] : memref<2x18x128xf32, #tpu.memory_space<vmem>>, vector<2x16x128xf32>
    %201 = tpu.concatenate %198, %199, %200 in 2 : vector<2x16x128xf32>, vector<2x16x128xf32>, vector<2x16x128xf32> -> vector<2x16x384xf32>
    %202 = vector.shape_cast %201 : vector<2x16x384xf32> to vector<32x384xf32>
    %203 = arith.truncf %202 : vector<32x384xf32> to vector<32x384xbf16>
    %c6 = arith.constant 6 : index
    %c0_237 = arith.constant 0 : index
    %c0_238 = arith.constant 0 : index
    %204 = vector.load %arg9[%c6, %c0_237, %c0_238] : memref<8x384x128xbf16, #tpu.memory_space<vmem>>, vector<1x384x128xbf16>
    %205 = vector.shape_cast %204 : vector<1x384x128xbf16> to vector<384x128xbf16>
    %cst_239 = arith.constant dense<0.000000e+00> : vector<32x128xf32>
    %206 = tpu.matmul %203, %205, %cst_239 {dimension_numbers = #tpu.dot_dimension_numbers<[1], [0], [0], [1], [0, 0, 1, 1], [], []>} : vector<32x384xbf16>, vector<384x128xbf16>, vector<32x128xf32> -> vector<32x128xf32>
    %c6_240 = arith.constant 6 : index
    %c0_241 = arith.constant 0 : index
    %207 = vector.load %arg3[%c6_240, %c0_241] : memref<8x128xf32, #tpu.memory_space<vmem>>, vector<1x128xf32>
    %208 = vector.broadcast %207 : vector<1x128xf32> to vector<32x128xf32>
    %209 = arith.addf %206, %208 : vector<32x128xf32>
    %210 = arith.addf %209, %167 : vector<32x128xf32>
    %cst_242 = arith.constant 0.000000e+00 : f32
    %211 = vector.broadcast %cst_242 : f32 to vector<32x128xf32>
    %212 = arith.maximumf %210, %211 : vector<32x128xf32>
    %213 = vector.shape_cast %212 : vector<32x128xf32> to vector<2x16x128xf32>
    %c0_243 = arith.constant 0 : index
    %c1_244 = arith.constant 1 : index
    %c0_245 = arith.constant 0 : index
    %214 = vector.load %arg8[%c0_243, %c1_244, %c0_245] : memref<2x18x128xf32, #tpu.memory_space<vmem>>, vector<2x16x128xf32>
    tpu.vector_store %arg8[%c0_243, %c1_244, %c0_245], %213 {strides = array<i32>} : memref<2x18x128xf32, #tpu.memory_space<vmem>>, vector<2x16x128xf32>,
    %c7_i32_246 = arith.constant 7 : i32
    %c7_i32_247 = arith.constant 7 : i32
    %c7_i32_248 = arith.constant 7 : i32
    %c0_i32_249 = arith.constant 0 : i32
    %c0_i32_250 = arith.constant 0 : i32
    %215 = tpu.memref_slice %arg2[%c7_i32_246, %c0_i32_249, %c0_i32_250] : memref<8x384x128xbf16, #tpu.memory_space<any>> -> memref<1x384x128xbf16, #tpu.memory_space<any>>
    %216 = tpu.memref_squeeze %215 : memref<1x384x128xbf16, #tpu.memory_space<any>> -> memref<384x128xbf16, #tpu.memory_space<any>>
    %c0_i32_251 = arith.constant 0 : i32
    %c0_i32_252 = arith.constant 0 : i32
    %217 = tpu.memref_slice %arg9[%c7_i32_247, %c0_i32_251, %c0_i32_252] : memref<8x384x128xbf16, #tpu.memory_space<vmem>> -> memref<1x384x128xbf16, #tpu.memory_space<vmem>>
    %218 = tpu.memref_squeeze %217 : memref<1x384x128xbf16, #tpu.memory_space<vmem>> -> memref<384x128xbf16, #tpu.memory_space<vmem>>
    %219 = tpu.memref_slice %arg10[%c7_i32_248] : memref<8x!tpu.dma_semaphore, #tpu.memory_space<semaphore_mem>> -> memref<1x!tpu.dma_semaphore, #tpu.memory_space<semaphore_mem>>
    %220 = tpu.memref_squeeze %219 : memref<1x!tpu.dma_semaphore, #tpu.memory_space<semaphore_mem>> -> memref<!tpu.dma_semaphore, #tpu.memory_space<semaphore_mem>>
    tpu.wait_dma2 semaphore(%220 : memref<!tpu.dma_semaphore, #tpu.memory_space<semaphore_mem>>) src(%216 : memref<384x128xbf16, #tpu.memory_space<any>>) dst(%218 : memref<384x128xbf16, #tpu.memory_space<vmem>>)
    %c0_253 = arith.constant 0 : index
    %c0_254 = arith.constant 0 : index
    %c0_255 = arith.constant 0 : index
    %221 = vector.load %arg8[%c0_253, %c0_254, %c0_255] : memref<2x18x128xf32, #tpu.memory_space<vmem>>, vector<2x16x128xf32>
    %c0_256 = arith.constant 0 : index
    %c1_257 = arith.constant 1 : index
    %c0_258 = arith.constant 0 : index
    %222 = vector.load %arg8[%c0_256, %c1_257, %c0_258] : memref<2x18x128xf32, #tpu.memory_space<vmem>>, vector<2x16x128xf32>
    %c0_259 = arith.constant 0 : index
    %c2_260 = arith.constant 2 : index
    %c0_261 = arith.constant 0 : index
    %223 = vector.load %arg8[%c0_259, %c2_260, %c0_261] : memref<2x18x128xf32, #tpu.memory_space<vmem>>, vector<2x16x128xf32>
    %224 = tpu.concatenate %221, %222, %223 in 2 : vector<2x16x128xf32>, vector<2x16x128xf32>, vector<2x16x128xf32> -> vector<2x16x384xf32>
    %225 = vector.shape_cast %224 : vector<2x16x384xf32> to vector<32x384xf32>
    %226 = arith.truncf %225 : vector<32x384xf32> to vector<32x384xbf16>
    %c7 = arith.constant 7 : index
    %c0_262 = arith.constant 0 : index
    %c0_263 = arith.constant 0 : index
    %227 = vector.load %arg9[%c7, %c0_262, %c0_263] : memref<8x384x128xbf16, #tpu.memory_space<vmem>>, vector<1x384x128xbf16>
    %228 = vector.shape_cast %227 : vector<1x384x128xbf16> to vector<384x128xbf16>
    %cst_264 = arith.constant dense<0.000000e+00> : vector<32x128xf32>
    %229 = tpu.matmul %226, %228, %cst_264 {dimension_numbers = #tpu.dot_dimension_numbers<[1], [0], [0], [1], [0, 0, 1, 1], [], []>} : vector<32x384xbf16>, vector<384x128xbf16>, vector<32x128xf32> -> vector<32x128xf32>
    %c7_265 = arith.constant 7 : index
    %c0_266 = arith.constant 0 : index
    %230 = vector.load %arg3[%c7_265, %c0_266] : memref<8x128xf32, #tpu.memory_space<vmem>>, vector<1x128xf32>
    %231 = vector.broadcast %230 : vector<1x128xf32> to vector<32x128xf32>
    %232 = arith.addf %229, %231 : vector<32x128xf32>
    %233 = vector.shape_cast %143 : vector<16x128xf32> to vector<2x8x128xf32>
    %cst_267 = arith.constant 0.000000e+00 : f32
    %234 = vector.broadcast %cst_267 : f32 to vector<2x8x128xf32>
    %235 = tpu.concatenate %233, %234 in 1 : vector<2x8x128xf32>, vector<2x8x128xf32> -> vector<2x16x128xf32>
    %236 = vector.shape_cast %232 : vector<32x128xf32> to vector<2x16x128xf32>
    %237 = arith.addf %236, %235 : vector<2x16x128xf32>
    %c0_268 = arith.constant 0 : index
    %c0_269 = arith.constant 0 : index
    %c0_270 = arith.constant 0 : index
    %238 = vector.load %arg6[%c0_268, %c0_269, %c0_270] : memref<2x16x128xf32, #tpu.memory_space<vmem>>, vector<2x16x128xf32>
    tpu.vector_store %arg6[%c0_268, %c0_269, %c0_270], %237 {strides = array<i32>} : memref<2x16x128xf32, #tpu.memory_space<vmem>>, vector<2x16x128xf32>,
    return
  }
  func.func @transform_0(%arg0: i32) -> (i32, i32, i32) {
    %c0_i32 = arith.constant 0 : i32
    %c0_i32_0 = arith.constant 0 : i32
    %c0_i32_1 = arith.constant 0 : i32
    %c0_i32_2 = arith.constant 0 : i32
    return %c0_i32, %c0_i32_0, %c0_i32_1 : i32, i32, i32
  }
  func.func @transform_2(%arg0: i32) -> (i32, i32) {
    %c0_i32 = arith.constant 0 : i32
    %c0_i32_0 = arith.constant 0 : i32
    %c0_i32_1 = arith.constant 0 : i32
    return %c0_i32, %c0_i32_0 : i32, i32
  }
  func.func @transform_3(%arg0: i32) -> (i32, i32) {
    %c0_i32 = arith.constant 0 : i32
    %c0_i32_0 = arith.constant 0 : i32
    %c0_i32_1 = arith.constant 0 : i32
    return %c0_i32, %c0_i32_0 : i32, i32
  }
  func.func @transform_4(%arg0: i32) -> (i32, i32) {
    %c0_i32 = arith.constant 0 : i32
    %c0_i32_0 = arith.constant 0 : i32
    %c0_i32_1 = arith.constant 0 : i32
    return %c0_i32, %c0_i32_0 : i32, i32
  }
  func.func @transform_5(%arg0: i32) -> (i32, i32, i32) {
    %c0_i32 = arith.constant 0 : i32
    %c0_i32_0 = arith.constant 0 : i32
    %c0_i32_1 = arith.constant 0 : i32
    %c0_i32_2 = arith.constant 0 : i32
    return %c0_i32, %c0_i32_0, %c0_i32_1 : i32, i32, i32
  }
}

</mosaic_0001>

<bundles_post_ra>
// kernel: resnet_ae_forward.1
= control target key start
LH: loop header
LB: loop body
LE: loop exit
PB: predicated region body
PF: predicated region fallthrough
CT: control target
= control target key end

     0   :  { %s2392_s18 = smov [#allocation4]   ;;  %v2393_v0 = vmov 0.0   ;;  %s2394_s29 = smov [#allocation4 + $0xc0]   ;;  %s2728_s1 = inlined_call_operand.hbm [shape: bf16[8,384,128], index: 1, kind: input, shape index: {}]   ;;  %s2729_s2 = inlined_call_operand.vmem [shape: f32[8,128], index: 2, kind: input, shape index: {}]   ;;  %s2730_s3 = inlined_call_operand.vmem [shape: f32[16,32], index: 3, kind: input, shape index: {}]   ;;  %s2731_s4 = inlined_call_operand.vmem [shape: f32[32,16], index: 4, kind: input, shape index: {}]   ;;  %s2732_s5 = inlined_call_operand.vmem [shape: f32[2,16,128], index: 5, kind: output, shape index: {}]   ;;  %s2733_s0 = inlined_call_operand.vmem [shape: f32[2,16,128], index: 0, kind: input, shape index: {}]  }
   0x1   :  { %s26_s19 = sshll.u32 %s2392_s18, 4  ;;  %s2434_s22 = scalar_lea.hbm %s2728_s1, 3072  ;;  %128 = vst [vmem:[#allocation2] sm:$0x1] %v2393_v0  ;;  %129 = vst [vmem:[#allocation2 + $0x18] sm:$0x1] %v2393_v0  ;;  %s2445_s19 = int_to_ptr.vmem [resolvable:$true] %s26_s19 }
   0x2   :  { %130 = vst [vmem:[#allocation2 + $0x11] sm:$0x1] %v2393_v0  ;;  %131 = vst [vmem:[#allocation2 + $0x29] sm:$0x1] %v2393_v0  ;;  %v136_v1 = vld [vmem:[%s2733_s0] sm:$0xff]  ;;  %v137_v2 = vld [vmem:[%s2733_s0 + $0x8] sm:$0xff]  ;;  %p2180_p0 = scmp.ne.s32.totalorder %s2728_s1, %s2434_s22  ;;  %p2183_p2 = scmp.lt.u32.totalorder %s2434_s22, %s2728_s1 }
   0x3   :  { %132 = vst [vmem:[#allocation3] sm:$0x1] %v2393_v0  ;;  %133 = vst [vmem:[#allocation3 + $0x18] sm:$0x1] %v2393_v0  ;;  %v138_v3 = vld [vmem:[%s2733_s0 + $0x10] sm:$0xff]  ;;  %s40_s30 = sshll.u32 %s2394_s29, 4  ;;  %s41_s30 = int_to_ptr.vmem [resolvable:$true] %s40_s30 }
   0x4   :  { %134 = vst [vmem:[#allocation3 + $0x11] sm:$0x1] %v2393_v0  ;;  %135 = vst [vmem:[#allocation3 + $0x29] sm:$0x1] %v2393_v0  ;;  %v139_v4 = vld [vmem:[%s2733_s0 + $0x18] sm:$0xff]  ;;  %s2457_s12 = scalar_lea.hbm %s2728_s1, 24576 }
   0x5   :  { %140 = vst [vmem:[#allocation2 + $0x1] sm:$0xff] %v136_v1  ;;  %141 = vst [vmem:[#allocation2 + $0x9] sm:$0xff] %v137_v2  ;;  %p2182_p1 = scmp.lt.u32.totalorder %s2457_s12, %s2434_s22 }
   0x6   :  { %142 = vst [vmem:[#allocation2 + $0x19] sm:$0xff] %v138_v3 }
   0x7   :  { %p2184_p3 = por %p2183_p2, %p2182_p1 }
   0x9   :  { %p2185_p4 = pnand %p2184_p3, %p2180_p0 }
   0xb   :  { %2188 = shalt.err (!%p2185_p4)  }
   0xc   :  { %s2189_s0 = scalar_lea.vmem %s2445_s19, 3072  ;;  %s2473_s17 = scalar_lea.vmem %s2445_s19, 24576 }
   0xd   :  { %p2190_p5 = scmp.ne.s32.totalorder %s2445_s19, %s2189_s0  ;;  %p2194_p6 = scmp.lt.s32.totalorder %s2445_s19, %s2445_s19 }
   0xe   :  { %p2195_p7 = scmp.lt.s32.totalorder %s2473_s17, %s2189_s0 }
  0x10   :  { %p2196_p8 = por %p2195_p7, %p2194_p6 }
  0x12   :  { %p2197_p9 = pnand %p2196_p8, %p2190_p5 }
  0x14   :  { %2200 = shalt.err (!%p2197_p9)  }
  0x15   :  { %29 = dma.hbm_to_vmem [thread:$0]  %s2728_s1, 3072, %s2445_s19, [#allocation5]  ;;  %143 = vst [vmem:[#allocation2 + $0x21] sm:$0xff] %v139_v4 }
  0x16   :  { %s2485_s24 = scalar_lea.hbm %s2728_s1, 6144 }
  0x17   :  { %p2202_p10 = scmp.ne.s32.totalorder %s2434_s22, %s2485_s24  ;;  %p2205_p11 = scmp.lt.u32.totalorder %s2457_s12, %s2485_s24 }
  0x18   :  { %p2207_p13 = scmp.lt.u32.totalorder %s2485_s24, %s2434_s22 }
  0x19   :  { %p2206_p12 = por %p2205_p11, %p2183_p2 }
  0x1b   :  { %p2208_p0 = por %p2207_p13, %p2206_p12 }
  0x1d   :  { %p2209_p1 = pnand %p2208_p0, %p2202_p10 }
  0x1f   :  { %2212 = shalt.err (!%p2209_p1)  }
  0x20   :  { %s2213_s27 = scalar_lea.vmem %s41_s30, 3072  ;;  %p2218_p4 = scmp.lt.s32.totalorder %s41_s30, %s2445_s19 }
  0x21   :  { %p2214_p3 = scmp.ne.s32.totalorder %s41_s30, %s2213_s27  ;;  %p2219_p5 = scmp.lt.s32.totalorder %s2473_s17, %s2213_s27 }
  0x23   :  { %p2220_p6 = por %p2219_p5, %p2218_p4 }
  0x25   :  { %p2221_p7 = pnand %p2220_p6, %p2214_p3 }
  0x27   :  { %2224 = shalt.err (!%p2221_p7)  }
  0x28   :  { %43 = dma.hbm_to_vmem [thread:$0]  %s2434_s22, 3072, %s41_s30, [#allocation5 + $0x1] }
  0x29   :  { %s2504_s6 = scalar_lea.hbm %s2728_s1, 9216  ;;  %s2395_s7 = smov [#allocation4 + $0x180]  }
  0x2a   :  { %s54_s8 = sshll.u32 %s2395_s7, 4  ;;  %s2396_s9 = smov [#allocation4 + $0x240]   ;;  %s55_s8 = int_to_ptr.vmem [resolvable:$true] %s54_s8 }
  0x2b   :  { %s68_s10 = sshll.u32 %s2396_s9, 4  ;;  %p2227_p2 = scmp.ne.s32.totalorder %s2485_s24, %s2504_s6  ;;  %s69_s10 = int_to_ptr.vmem [resolvable:$true] %s68_s10 }
  0x2c   :  { %p2229_p8 = scmp.lt.u32.totalorder %s2485_s24, %s2728_s1  ;;  %p2230_p9 = scmp.lt.u32.totalorder %s2457_s12, %s2504_s6 }
  0x2d   :  { %p2232_p11 = scmp.lt.u32.totalorder %s2504_s6, %s2485_s24 }
  0x2e   :  { %p2231_p10 = por %p2230_p9, %p2229_p8 }
  0x30   :  { %p2233_p12 = por %p2232_p11, %p2231_p10 }
  0x32   :  { %p2234_p13 = pnand %p2233_p12, %p2227_p2 }
  0x34   :  { %2237 = shalt.err (!%p2234_p13)  }
  0x35   :  { %s2238_s22 = scalar_lea.vmem %s55_s8, 3072  ;;  %p2243_p1 = scmp.lt.s32.totalorder %s55_s8, %s2445_s19 }
  0x36   :  { %p2239_p0 = scmp.ne.s32.totalorder %s55_s8, %s2238_s22  ;;  %p2244_p3 = scmp.lt.s32.totalorder %s2473_s17, %s2238_s22 }
  0x38   :  { %p2245_p4 = por %p2244_p3, %p2243_p1 }
  0x3a   :  { %p2246_p5 = pnand %p2245_p4, %p2239_p0 }
  0x3c   :  { %2249 = shalt.err (!%p2246_p5)  }
  0x3d   :  { %57 = dma.hbm_to_vmem [thread:$0]  %s2485_s24, 3072, %s55_s8, [#allocation5 + $0x2] }
  0x3e   :  { %s2522_s15 = scalar_lea.hbm %s2728_s1, 12288  ;;  %p2254_p7 = scmp.lt.u32.totalorder %s2504_s6, %s2728_s1 }
  0x3f   :  { %p2252_p6 = scmp.ne.s32.totalorder %s2504_s6, %s2522_s15  ;;  %p2255_p2 = scmp.lt.u32.totalorder %s2457_s12, %s2522_s15 }
  0x40   :  { %p2257_p9 = scmp.lt.u32.totalorder %s2522_s15, %s2504_s6 }
  0x41   :  { %p2256_p8 = por %p2255_p2, %p2254_p7 }
  0x43   :  { %p2258_p10 = por %p2257_p9, %p2256_p8 }
  0x45   :  { %p2259_p11 = pnand %p2258_p10, %p2252_p6 }
  0x47   :  { %2262 = shalt.err (!%p2259_p11)  }
  0x48   :  { %s2263_s18 = scalar_lea.vmem %s69_s10, 3072  ;;  %p2268_p13 = scmp.lt.s32.totalorder %s69_s10, %s2445_s19 }
  0x49   :  { %p2264_p12 = scmp.ne.s32.totalorder %s69_s10, %s2263_s18  ;;  %p2269_p0 = scmp.lt.s32.totalorder %s2473_s17, %s2263_s18 }
  0x4b   :  { %p2270_p1 = por %p2269_p0, %p2268_p13 }
  0x4d   :  { %p2271_p3 = pnand %p2270_p1, %p2264_p12 }
  0x4f   :  { %2274 = shalt.err (!%p2271_p3)  }
  0x50   :  { %71 = dma.hbm_to_vmem [thread:$0]  %s2504_s6, 3072, %s69_s10, [#allocation5 + $0x3] }
  0x51   :  { %s2540_s23 = scalar_lea.hbm %s2728_s1, 15360  ;;  %s2397_s24 = smov [#allocation4 + $0x300]  }
  0x52   :  { %s82_s25 = sshll.u32 %s2397_s24, 4  ;;  %s2398_s26 = smov [#allocation4 + $0x3c0]   ;;  %s83_s25 = int_to_ptr.vmem [resolvable:$true] %s82_s25 }
  0x53   :  { %s96_s27 = sshll.u32 %s2398_s26, 4  ;;  %p2277_p4 = scmp.ne.s32.totalorder %s2522_s15, %s2540_s23  ;;  %s97_s27 = int_to_ptr.vmem [resolvable:$true] %s96_s27 }
  0x54   :  { %p2279_p5 = scmp.lt.u32.totalorder %s2522_s15, %s2728_s1  ;;  %p2280_p6 = scmp.lt.u32.totalorder %s2457_s12, %s2540_s23 }
  0x55   :  { %p2282_p2 = scmp.lt.u32.totalorder %s2540_s23, %s2522_s15 }
  0x56   :  { %p2281_p7 = por %p2280_p6, %p2279_p5 }
  0x58   :  { %p2283_p8 = por %p2282_p2, %p2281_p7 }
  0x5a   :  { %p2284_p9 = pnand %p2283_p8, %p2277_p4 }
  0x5c   :  { %2287 = shalt.err (!%p2284_p9)  }
  0x5d   :  { %s2288_s6 = scalar_lea.vmem %s83_s25, 3072  ;;  %p2293_p11 = scmp.lt.s32.totalorder %s83_s25, %s2445_s19 }
  0x5e   :  { %p2289_p10 = scmp.ne.s32.totalorder %s83_s25, %s2288_s6  ;;  %p2294_p12 = scmp.lt.s32.totalorder %s2473_s17, %s2288_s6 }
  0x60   :  { %p2295_p13 = por %p2294_p12, %p2293_p11 }
  0x62   :  { %p2296_p0 = pnand %p2295_p13, %p2289_p10 }
  0x64   :  { %2299 = shalt.err (!%p2296_p0)  }
  0x65   :  { %85 = dma.hbm_to_vmem [thread:$0]  %s2522_s15, 3072, %s83_s25, [#allocation5 + $0x4] }
  0x66   :  { %s2558_s9 = scalar_lea.hbm %s2728_s1, 18432  ;;  %p2304_p3 = scmp.lt.u32.totalorder %s2540_s23, %s2728_s1 }
  0x67   :  { %p2302_p1 = scmp.ne.s32.totalorder %s2540_s23, %s2558_s9  ;;  %p2305_p4 = scmp.lt.u32.totalorder %s2457_s12, %s2558_s9 }
  0x68   :  { %p2307_p6 = scmp.lt.u32.totalorder %s2558_s9, %s2540_s23 }
  0x69   :  { %p2306_p5 = por %p2305_p4, %p2304_p3 }
  0x6b   :  { %p2308_p7 = por %p2307_p6, %p2306_p5 }
  0x6d   :  { %p2309_p2 = pnand %p2308_p7, %p2302_p1 }
  0x6f   :  { %2312 = shalt.err (!%p2309_p2)  }
  0x70   :  { %s2313_s13 = scalar_lea.vmem %s97_s27, 3072  ;;  %p2318_p9 = scmp.lt.s32.totalorder %s97_s27, %s2445_s19 }
  0x71   :  { %p2314_p8 = scmp.ne.s32.totalorder %s97_s27, %s2313_s13  ;;  %p2319_p10 = scmp.lt.s32.totalorder %s2473_s17, %s2313_s13 }
  0x73   :  { %p2320_p11 = por %p2319_p10, %p2318_p9 }
  0x75   :  { %p2321_p12 = pnand %p2320_p11, %p2314_p8 }
  0x77   :  { %2324 = shalt.err (!%p2321_p12)  }
  0x78   :  { %99 = dma.hbm_to_vmem [thread:$0]  %s2540_s23, 3072, %s97_s27, [#allocation5 + $0x5] }
  0x79   :  { %s2576_s14 = scalar_lea.hbm %s2728_s1, 21504  ;;  %s2399_s15 = smov [#allocation4 + $0x480]  }
  0x7a   :  { %s110_s16 = sshll.u32 %s2399_s15, 4  ;;  %s2400_s0 = smov [#allocation4 + $0x540]   ;;  %s111_s16 = int_to_ptr.vmem [resolvable:$true] %s110_s16 }
  0x7b   :  { %s124_s18 = sshll.u32 %s2400_s0, 4  ;;  %p2327_p13 = scmp.ne.s32.totalorder %s2558_s9, %s2576_s14  ;;  %s125_s18 = int_to_ptr.vmem [resolvable:$true] %s124_s18 }
  0x7c   :  { %p2329_p0 = scmp.lt.u32.totalorder %s2558_s9, %s2728_s1  ;;  %p2330_p1 = scmp.lt.u32.totalorder %s2457_s12, %s2576_s14 }
  0x7d   :  { %p2332_p4 = scmp.lt.u32.totalorder %s2576_s14, %s2558_s9 }
  0x7e   :  { %p2331_p3 = por %p2330_p1, %p2329_p0 }
  0x80   :  { %p2333_p5 = por %p2332_p4, %p2331_p3 }
  0x82   :  { %p2334_p6 = pnand %p2333_p5, %p2327_p13 }
  0x84   :  { %2337 = shalt.err (!%p2334_p6)  }
  0x85   :  { %s2338_s23 = scalar_lea.vmem %s111_s16, 3072  ;;  %p2343_p2 = scmp.lt.s32.totalorder %s111_s16, %s2445_s19 }
  0x86   :  { %p2339_p7 = scmp.ne.s32.totalorder %s111_s16, %s2338_s23  ;;  %p2344_p8 = scmp.lt.s32.totalorder %s2473_s17, %s2338_s23 }
  0x88   :  { %p2345_p9 = por %p2344_p8, %p2343_p2 }
  0x8a   :  { %p2346_p10 = pnand %p2345_p9, %p2339_p7 }
  0x8c   :  { %2349 = shalt.err (!%p2346_p10)  }
  0x8d   :  { %113 = dma.hbm_to_vmem [thread:$0]  %s2558_s9, 3072, %s111_s16, [#allocation5 + $0x6] }
  0x8e   :  { %p2352_p11 = scmp.ne.s32.totalorder %s2576_s14, %s2457_s12  ;;  %p2354_p12 = scmp.lt.u32.totalorder %s2576_s14, %s2728_s1 }
  0x8f   :  { %p2355_p13 = scmp.lt.u32.totalorder %s2457_s12, %s2457_s12 }
  0x91   :  { %p2356_p0 = por %p2355_p13, %p2354_p12 }
  0x93   :  { %p2358_p3 = por %p2356_p0, %p2330_p1 }
  0x95   :  { %p2359_p4 = pnand %p2358_p3, %p2352_p11 }
  0x97   :  { %2362 = shalt.err (!%p2359_p4)  }
  0x98   :  { %s2363_s26 = scalar_lea.vmem %s125_s18, 3072  ;;  %p2368_p6 = scmp.lt.s32.totalorder %s125_s18, %s2445_s19 }
  0x99   :  { %p2364_p5 = scmp.ne.s32.totalorder %s125_s18, %s2363_s26  ;;  %p2369_p7 = scmp.lt.s32.totalorder %s2473_s17, %s2363_s26 }
  0x9b   :  { %p2370_p2 = por %p2369_p7, %p2368_p6 }
  0x9d   :  { %p2371_p8 = pnand %p2370_p2, %p2364_p5 }
  0x9f   :  { %2374 = shalt.err (!%p2371_p8)  }
  0xa0   :  { %127 = dma.hbm_to_vmem [thread:$0]  %s2576_s14, 3072, %s125_s18, [#allocation5 + $0x7] }
  0xa1   :  { %2376 = dma.done.wait [#allocation5], 3072 }
  0xa2   :  { %2377 = vsyncadd [#allocation5], 4294964224  ;;  %v174_v5 = vld [vmem:[#allocation4 + $0x40] sm:$0xff]  ;;  %v175_v7 = vld [vmem:[#allocation4 + $0x48] sm:$0xff] }
  0xa3   :  { %v166_v6 = vld [vmem:[#allocation4] sm:$0xff]  ;;  %1661 = vmatprep.subr.bf16.mxu0 %v174_v5  ;;  %v183_v9 = vld [vmem:[#allocation4 + $0x88] sm:$0xff]  ;;  %v176_v11 = vld [vmem:[#allocation4 + $0x50] sm:$0xff] }
  0xa4   :  { %v182_v8 = vld [vmem:[#allocation4 + $0x80] sm:$0xff]  ;;  %1662 = vmatpush3.bf16.msra.mxu0 %v166_v6  ;;  %v167_v10 = vld [vmem:[#allocation4 + $0x8] sm:$0xff]  ;;  %v184_v12 = vld [vmem:[#allocation4 + $0x90] sm:$0xff] }
  0xa5   :  { %1977 = vmatprep.subr.bf16.mxu1 %v182_v8  ;;  %1663 = vmatprep.subr.bf16.mxu0 %v175_v7  ;;  %v168_v13 = vld [vmem:[#allocation4 + $0x10] sm:$0xff]  ;;  %v152_v14 = vld [vmem:[#allocation2 + $0x1] sm:$0xff]  ;;  %v177_v15 = vld [vmem:[#allocation4 + $0x58] sm:$0xff] }
  0xa6   :  { %1978 = vmatpush3.bf16.msra.mxu1 %v182_v8  ;;  %v153_v16 = vld [vmem:[#allocation2 + $0x9] sm:$0xff]  ;;  %v185_v17 = vld [vmem:[#allocation4 + $0x98] sm:$0xff]  ;;  %v178_v23 = vld [vmem:[#allocation4 + $0x60] sm:$0xff] }
  0xa7   :  { %1979 = vmatprep.subr.bf16.mxu1 %v183_v9  ;;  %v161_v18 = vpack.c.bf16 %v153_v16, %v152_v14  ;;  %v156_v19 = vld [vmem:[#allocation2 + $0x2] sm:$0xff]  ;;  %v157_v20 = vld [vmem:[#allocation2 + $0xa] sm:$0xff]  ;;  %v169_v22 = vld [vmem:[#allocation4 + $0x18] sm:$0xff] }
  0xa8   :  { %1664 = vmatpush3.bf16.msra.mxu0 %v167_v10  ;;  %v162_v21 = vpack.c.bf16 %v157_v20, %v156_v19  ;;  %v186_v24 = vld [vmem:[#allocation4 + $0xa0] sm:$0xff]  ;;  %v179_v26 = vld [vmem:[#allocation4 + $0x68] sm:$0xff]  ;;  %v180_v29 = vld [vmem:[#allocation4 + $0x70] sm:$0xff] }
  0xa9   :  { %1665 = vmatprep.subr.bf16.mxu0 %v176_v11  ;;  %227 = vmatprep.mubr.bf16.mxu0 %v161_v18  ;;  %v170_v25 = vld [vmem:[#allocation4 + $0x20] sm:$0xff]  ;;  %v187_v27 = vld [vmem:[#allocation4 + $0xa8] sm:$0xff]  ;;  %v188_v30 = vld [vmem:[#allocation4 + $0xb0] sm:$0xff] }
  0xaa   :  { %1980 = vmatpush3.bf16.msra.mxu1 %v183_v9  ;;  %1993 = vmatprep.mubr.bf16.mxu1 %v162_v21  ;;  %v171_v28 = vld [vmem:[#allocation4 + $0x28] sm:$0xff]  ;;  %v172_v31 = vld [vmem:[#allocation4 + $0x30] sm:$0xff]  ;;  %v181_v32 = vld [vmem:[#allocation4 + $0x78] sm:$0xff] }
  0xab   :  { %1981 = vmatprep.subr.bf16.mxu1 %v184_v12  ;;  %v173_v33 = vld [vmem:[#allocation4 + $0x38] sm:$0xff]  ;;  %v148_v35 = vld [vmem:[#allocation2] sm:$0xff]  ;;  %v149_v36 = vld [vmem:[#allocation2 + $0x8] sm:$0xff] }
  0xac   :  { %1666 = vmatpush3.bf16.msra.mxu0 %v168_v13  ;;  %v189_v34 = vld [vmem:[#allocation4 + $0xb8] sm:$0xff]  ;;  %v159_v38 = vld [vmem:[#allocation2 + $0x22] sm:$0xff]  ;;  %v160_v41 = vpack.c.bf16 %v149_v36, %v148_v35  ;;  %v1639_v50 = vld [vmem:[%s2729_s2] ss:$0 sm:$0xff] }
  0xad   :  { %1667 = vmatprep.subr.bf16.mxu0 %v177_v15  ;;  %v158_v37 = vld [vmem:[#allocation2 + $0x1a] sm:$0xff] }
  0xae   :  { %1982 = vmatpush3.bf16.msra.mxu1 %v184_v12  ;;  %v154_v39 = vld [vmem:[#allocation2 + $0x19] sm:$0xff]  ;;  %v155_v40 = vld [vmem:[#allocation2 + $0x21] sm:$0xff]  ;;  %v165_v42 = vpack.c.bf16 %v159_v38, %v158_v37 }
  0xaf   :  { %1983 = vmatprep.subr.bf16.mxu1 %v185_v17  ;;  %v164_v43 = vpack.c.bf16 %v155_v40, %v154_v39  ;;  %v150_v44 = vld [vmem:[#allocation2 + $0x18] sm:$0xff]  ;;  %v151_v45 = vld [vmem:[#allocation2 + $0x20] sm:$0xff] }
  0xb0   :  { %1668 = vmatpush3.bf16.msra.mxu0 %v169_v22  ;;  %v163_v46 = vpack.c.bf16 %v151_v45, %v150_v44 }
  0xb1   :  { %1669 = vmatprep.subr.bf16.mxu0 %v178_v23 }
  0xb2   :  { %1984 = vmatpush3.bf16.msra.mxu1 %v185_v17 }
  0xb3   :  { %1985 = vmatprep.subr.bf16.mxu1 %v186_v24 }
  0xb4   :  { %1670 = vmatpush3.bf16.msra.mxu0 %v170_v25 }
  0xb5   :  { %1671 = vmatprep.subr.bf16.mxu0 %v179_v26 }
  0xb6   :  { %1986 = vmatpush3.bf16.msra.mxu1 %v186_v24 }
  0xb7   :  { %1987 = vmatprep.subr.bf16.mxu1 %v187_v27 }
  0xb8   :  { %1672 = vmatpush3.bf16.msra.mxu0 %v171_v28 }
  0xb9   :  { %1673 = vmatprep.subr.bf16.mxu0 %v180_v29 }
  0xba   :  { %1988 = vmatpush3.bf16.msra.mxu1 %v187_v27 }
  0xbb   :  { %1989 = vmatprep.subr.bf16.mxu1 %v188_v30 }
  0xbc   :  { %1674 = vmatpush3.bf16.msra.mxu0 %v172_v31 }
  0xbd   :  { %1675 = vmatprep.subr.bf16.mxu0 %v181_v32 }
  0xbe   :  { %1990 = vmatpush3.bf16.msra.mxu1 %v188_v30 }
  0xbf   :  { %1991 = vmatprep.subr.bf16.mxu1 %v189_v34 }
  0xc0   :  { %1676 = vmatpush3.bf16.msra.mxu0 %v173_v33 }
  0xc2   :  { %1992 = vmatpush3.bf16.msra.mxu1 %v189_v34 }
  0xc3   :  { %228 = vmatmul.mubr.bf16.vlgmr.msra.gmra.mrb[0].mxu0 %v160_v41 }
  0xc4   :  { %235 = vmatprep.mubr.bf16.mxu0 %v164_v43 }
  0xc5   :  { %1994 = vmatmul.mubr.bf16.vlgmr.msra.gmra.mrb[0].mxu1 %v165_v42 }
  0xcb   :  { %236 = vmatmul.mubr.bf16.gmra.mrb[4].mxu0 %v163_v46 }
 0x196   :  { %v1677_v47 = vpop.f32.mrb[0].mxu0 }
 0x197   :  { %v1678_v48 = vpop.f32.mrb[1].mxu0 }
 0x198   :  { %v1995_v49 = vpop.f32.mrb[0].mxu1  ;;  %v1679_v51 = vadd.f32 %v1678_v48, %v1677_v47  ;;  %v1680_v52 = vpop.f32.mrb[2].mxu0 }
 0x199   :  { %v278_v53 = vpop.f32.mrb[1].mxu1  ;;  %v1681_v54 = vpop.f32.mrb[3].mxu0 }
 0x19a   :  { %v1996_v55 = vpop.f32.mrb[2].mxu1  ;;  %v1682_v56 = vadd.f32 %v1681_v54, %v1680_v52  ;;  %v230_v57 = vadd.f32 %v1679_v51, %v1639_v50 }
 0x19b   :  { %v281_v58 = vpop.f32.mrb[3].mxu1 }
 0x19c   :  { %v2611_v59 = vadd.f32 %v278_v53, %v230_v57  ;;  %v233_v60 = vadd.f32 %v1682_v56, %v1639_v50 }
 0x19e   :  { %v293_v61 = vmax.f32 %v2611_v59, 0.0  ;;  %v2614_v62 = vadd.f32 %v281_v58, %v233_v60  ;;  %v1683_v63 = vpop.f32.mrb[4].mxu0 }
 0x19f   :  { %v1684_v0 = vpop.f32.mrb[5].mxu0 }
 0x1a0   :  { %297 = vst [vmem:[#allocation3 + $0x1] sm:$0xff] %v293_v61  ;;  %v294_v1 = vmax.f32 %v2614_v62, 0.0  ;;  %v1685_v2 = vadd.f32 %v1684_v0, %v1683_v63  ;;  %v1686_v3 = vpop.f32.mrb[6].mxu0 }
 0x1a1   :  { %v1687_v4 = vpop.f32.mrb[7].mxu0 }
 0x1a2   :  { %298 = vst [vmem:[#allocation3 + $0x9] sm:$0xff] %v294_v1  ;;  %v238_v5 = vadd.f32 %v1685_v2, %v1639_v50  ;;  %v1688_v6 = vadd.f32 %v1687_v4, %v1686_v3 }
 0x1a4   :  { %v2621_v7 = vadd.f32 %v1995_v49, %v238_v5  ;;  %v241_v8 = vadd.f32 %v1688_v6, %v1639_v50 }
 0x1a6   :  { %v295_v9 = vmax.f32 %v2621_v7, 0.0  ;;  %v2624_v10 = vadd.f32 %v1996_v55, %v241_v8 }
 0x1a8   :  { %299 = vst [vmem:[#allocation3 + $0x19] sm:$0xff] %v295_v9  ;;  %v296_v11 = vmax.f32 %v2624_v10, 0.0 }
 0x1aa   :  { %300 = vst [vmem:[#allocation3 + $0x21] sm:$0xff] %v296_v11 }
 0x1ab   :  { %2378 = dma.done.wait [#allocation5 + $0x1], 3072 }
 0x1ac   :  { %2379 = vsyncadd [#allocation5 + $0x1], 4294964224  ;;  %v329_v12 = vld [vmem:[#allocation4 + $0x100] sm:$0xff]  ;;  %v330_v14 = vld [vmem:[#allocation4 + $0x108] sm:$0xff] }
 0x1ad   :  { %v321_v13 = vld [vmem:[#allocation4 + $0xc0] sm:$0xff]  ;;  %1699 = vmatprep.subr.bf16.mxu0 %v329_v12  ;;  %v338_v16 = vld [vmem:[#allocation4 + $0x148] sm:$0xff]  ;;  %v331_v18 = vld [vmem:[#allocation4 + $0x110] sm:$0xff] }
 0x1ae   :  { %v337_v15 = vld [vmem:[#allocation4 + $0x140] sm:$0xff]  ;;  %1700 = vmatpush3.bf16.msra.mxu0 %v321_v13  ;;  %v322_v17 = vld [vmem:[#allocation4 + $0xc8] sm:$0xff]  ;;  %v339_v19 = vld [vmem:[#allocation4 + $0x150] sm:$0xff] }
 0x1af   :  { %1997 = vmatprep.subr.bf16.mxu1 %v337_v15  ;;  %1701 = vmatprep.subr.bf16.mxu0 %v330_v14  ;;  %v323_v20 = vld [vmem:[#allocation4 + $0xd0] sm:$0xff]  ;;  %v332_v22 = vld [vmem:[#allocation4 + $0x118] sm:$0xff]  ;;  %v333_v30 = vld [vmem:[#allocation4 + $0x120] sm:$0xff] }
 0x1b0   :  { %1998 = vmatpush3.bf16.msra.mxu1 %v337_v15  ;;  %v307_v21 = vld [vmem:[#allocation3 + $0x1] sm:$0xff]  ;;  %v308_v23 = vld [vmem:[#allocation3 + $0x9] sm:$0xff]  ;;  %v334_v33 = vld [vmem:[#allocation4 + $0x128] sm:$0xff] }
 0x1b1   :  { %1999 = vmatprep.subr.bf16.mxu1 %v338_v16  ;;  %v340_v24 = vld [vmem:[#allocation4 + $0x158] sm:$0xff]  ;;  %v316_v25 = vpack.c.bf16 %v308_v23, %v307_v21  ;;  %v341_v31 = vld [vmem:[#allocation4 + $0x160] sm:$0xff]  ;;  %v342_v34 = vld [vmem:[#allocation4 + $0x168] sm:$0xff] }
 0x1b2   :  { %1702 = vmatpush3.bf16.msra.mxu0 %v322_v17  ;;  %v311_v26 = vld [vmem:[#allocation3 + $0x2] sm:$0xff]  ;;  %v312_v27 = vld [vmem:[#allocation3 + $0xa] sm:$0xff]  ;;  %v326_v35 = vld [vmem:[#allocation4 + $0xe8] sm:$0xff] }
 0x1b3   :  { %1703 = vmatprep.subr.bf16.mxu0 %v331_v18  ;;  %v317_v28 = vpack.c.bf16 %v312_v27, %v311_v26  ;;  %v324_v29 = vld [vmem:[#allocation4 + $0xd8] sm:$0xff]  ;;  %382 = vmatprep.mubr.bf16.mxu0 %v316_v25  ;;  %v325_v32 = vld [vmem:[#allocation4 + $0xe0] sm:$0xff]  ;;  %v335_v36 = vld [vmem:[#allocation4 + $0x130] sm:$0xff] }
 0x1b4   :  { %2000 = vmatpush3.bf16.msra.mxu1 %v338_v16  ;;  %v343_v37 = vld [vmem:[#allocation4 + $0x170] sm:$0xff]  ;;  %v336_v39 = vld [vmem:[#allocation4 + $0x138] sm:$0xff]  ;;  %v305_v51 = vld [vmem:[#allocation3 + $0x18] sm:$0xff] }
 0x1b5   :  { %2001 = vmatprep.subr.bf16.mxu1 %v339_v19  ;;  %2013 = vmatprep.mubr.bf16.mxu1 %v317_v28  ;;  %v327_v38 = vld [vmem:[#allocation4 + $0xf0] sm:$0xff]  ;;  %v328_v40 = vld [vmem:[#allocation4 + $0xf8] sm:$0xff]  ;;  %v1640_v57 = vld [vmem:[%s2729_s2 + $0x1] ss:$0 sm:$0xff] }
 0x1b6   :  { %1704 = vmatpush3.bf16.msra.mxu0 %v323_v20  ;;  %v344_v41 = vld [vmem:[#allocation4 + $0x178] sm:$0xff]  ;;  %v303_v42 = vld [vmem:[#allocation3] sm:$0xff] }
 0x1b7   :  { %1705 = vmatprep.subr.bf16.mxu0 %v332_v22  ;;  %v304_v43 = vld [vmem:[#allocation3 + $0x8] sm:$0xff]  ;;  %v313_v44 = vld [vmem:[#allocation3 + $0x1a] sm:$0xff] }
 0x1b8   :  { %2002 = vmatpush3.bf16.msra.mxu1 %v339_v19  ;;  %v314_v45 = vld [vmem:[#allocation3 + $0x22] sm:$0xff]  ;;  %v309_v46 = vld [vmem:[#allocation3 + $0x19] sm:$0xff]  ;;  %v315_v48 = vpack.c.bf16 %v304_v43, %v303_v42 }
 0x1b9   :  { %2003 = vmatprep.subr.bf16.mxu1 %v340_v24  ;;  %v310_v47 = vld [vmem:[#allocation3 + $0x21] sm:$0xff]  ;;  %v320_v49 = vpack.c.bf16 %v314_v45, %v313_v44 }
 0x1ba   :  { %1706 = vmatpush3.bf16.msra.mxu0 %v324_v29  ;;  %v319_v50 = vpack.c.bf16 %v310_v47, %v309_v46  ;;  %v306_v52 = vld [vmem:[#allocation3 + $0x20] sm:$0xff] }
 0x1bb   :  { %1707 = vmatprep.subr.bf16.mxu0 %v333_v30  ;;  %v318_v53 = vpack.c.bf16 %v306_v52, %v305_v51 }
 0x1bc   :  { %2004 = vmatpush3.bf16.msra.mxu1 %v340_v24 }
 0x1bd   :  { %2005 = vmatprep.subr.bf16.mxu1 %v341_v31 }
 0x1be   :  { %1708 = vmatpush3.bf16.msra.mxu0 %v325_v32 }
 0x1bf   :  { %1709 = vmatprep.subr.bf16.mxu0 %v334_v33 }
 0x1c0   :  { %2006 = vmatpush3.bf16.msra.mxu1 %v341_v31 }
 0x1c1   :  { %2007 = vmatprep.subr.bf16.mxu1 %v342_v34 }
 0x1c2   :  { %1710 = vmatpush3.bf16.msra.mxu0 %v326_v35 }
 0x1c3   :  { %1711 = vmatprep.subr.bf16.mxu0 %v335_v36 }
 0x1c4   :  { %2008 = vmatpush3.bf16.msra.mxu1 %v342_v34 }
 0x1c5   :  { %2009 = vmatprep.subr.bf16.mxu1 %v343_v37 }
 0x1c6   :  { %1712 = vmatpush3.bf16.msra.mxu0 %v327_v38 }
 0x1c7   :  { %1713 = vmatprep.subr.bf16.mxu0 %v336_v39 }
 0x1c8   :  { %2010 = vmatpush3.bf16.msra.mxu1 %v343_v37 }
 0x1c9   :  { %2011 = vmatprep.subr.bf16.mxu1 %v344_v41 }
 0x1ca   :  { %1714 = vmatpush3.bf16.msra.mxu0 %v328_v40 }
 0x1cc   :  { %2012 = vmatpush3.bf16.msra.mxu1 %v344_v41 }
 0x1cd   :  { %383 = vmatmul.mubr.bf16.vlgmr.msra.gmra.mrb[8].mxu0 %v315_v48 }
 0x1ce   :  { %390 = vmatprep.mubr.bf16.mxu0 %v319_v50 }
 0x1cf   :  { %2014 = vmatmul.mubr.bf16.vlgmr.msra.gmra.mrb[4].mxu1 %v320_v49 }
 0x1d5   :  { %391 = vmatmul.mubr.bf16.gmra.mrb[12].mxu0 %v318_v53 }
 0x2a0   :  { %v1715_v54 = vpop.f32.mrb[8].mxu0 }
 0x2a1   :  { %v1716_v55 = vpop.f32.mrb[9].mxu0 }
 0x2a2   :  { %v2015_v56 = vpop.f32.mrb[4].mxu1  ;;  %v1717_v58 = vadd.f32 %v1716_v55, %v1715_v54  ;;  %v1718_v60 = vpop.f32.mrb[10].mxu0 }
 0x2a3   :  { %v433_v63 = vpop.f32.mrb[5].mxu1  ;;  %v1719_v0 = vpop.f32.mrb[11].mxu0 }
 0x2a4   :  { %v2016_v2 = vpop.f32.mrb[6].mxu1  ;;  %v1720_v3 = vadd.f32 %v1719_v0, %v1718_v60  ;;  %v385_v4 = vadd.f32 %v1717_v58, %v1640_v57 }
 0x2a5   :  { %v436_v5 = vpop.f32.mrb[7].mxu1 }
 0x2a6   :  { %v434_v6 = vadd.f32 %v433_v63, %v385_v4  ;;  %v388_v8 = vadd.f32 %v1720_v3, %v1640_v57 }
 0x2a8   :  { %v448_v12 = vmax.f32 %v434_v6, 0.0  ;;  %v437_v13 = vadd.f32 %v436_v5, %v388_v8  ;;  %v1721_v14 = vpop.f32.mrb[12].mxu0 }
 0x2a9   :  { %v1722_v15 = vpop.f32.mrb[13].mxu0 }
 0x2aa   :  { %452 = vst [vmem:[#allocation2 + $0x1] sm:$0xff] %v448_v12  ;;  %v449_v16 = vmax.f32 %v437_v13, 0.0  ;;  %v1723_v17 = vadd.f32 %v1722_v15, %v1721_v14  ;;  %v1724_v18 = vpop.f32.mrb[14].mxu0 }
 0x2ab   :  { %v1725_v19 = vpop.f32.mrb[15].mxu0 }
 0x2ac   :  { %453 = vst [vmem:[#allocation2 + $0x9] sm:$0xff] %v449_v16  ;;  %v393_v20 = vadd.f32 %v1723_v17, %v1640_v57  ;;  %v1726_v21 = vadd.f32 %v1725_v19, %v1724_v18 }
 0x2ae   :  { %v442_v22 = vadd.f32 %v2015_v56, %v393_v20  ;;  %v396_v23 = vadd.f32 %v1726_v21, %v1640_v57 }
 0x2b0   :  { %v450_v24 = vmax.f32 %v442_v22, 0.0  ;;  %v445_v25 = vadd.f32 %v2016_v2, %v396_v23 }
 0x2b2   :  { %454 = vst [vmem:[#allocation2 + $0x19] sm:$0xff] %v450_v24  ;;  %v451_v26 = vmax.f32 %v445_v25, 0.0 }
 0x2b4   :  { %455 = vst [vmem:[#allocation2 + $0x21] sm:$0xff] %v451_v26 }
 0x2b5   :  { %2380 = dma.done.wait [#allocation5 + $0x2], 3072 }
 0x2b6   :  { %2381 = vsyncadd [#allocation5 + $0x2], 4294964224  ;;  %v484_v27 = vld [vmem:[#allocation4 + $0x1c0] sm:$0xff]  ;;  %v485_v29 = vld [vmem:[#allocation4 + $0x1c8] sm:$0xff] }
 0x2b7   :  { %v476_v28 = vld [vmem:[#allocation4 + $0x180] sm:$0xff]  ;;  %1737 = vmatprep.subr.bf16.mxu0 %v484_v27  ;;  %v493_v31 = vld [vmem:[#allocation4 + $0x208] sm:$0xff]  ;;  %v486_v33 = vld [vmem:[#allocation4 + $0x1d0] sm:$0xff] }
 0x2b8   :  { %v492_v30 = vld [vmem:[#allocation4 + $0x200] sm:$0xff]  ;;  %1738 = vmatpush3.bf16.msra.mxu0 %v476_v28  ;;  %v477_v32 = vld [vmem:[#allocation4 + $0x188] sm:$0xff]  ;;  %v494_v34 = vld [vmem:[#allocation4 + $0x210] sm:$0xff] }
 0x2b9   :  { %2017 = vmatprep.subr.bf16.mxu1 %v492_v30  ;;  %1739 = vmatprep.subr.bf16.mxu0 %v485_v29  ;;  %v478_v35 = vld [vmem:[#allocation4 + $0x190] sm:$0xff]  ;;  %v462_v36 = vld [vmem:[#allocation2 + $0x1] sm:$0xff]  ;;  %v487_v37 = vld [vmem:[#allocation4 + $0x1d8] sm:$0xff] }
 0x2ba   :  { %2018 = vmatpush3.bf16.msra.mxu1 %v492_v30  ;;  %v463_v38 = vld [vmem:[#allocation2 + $0x9] sm:$0xff]  ;;  %v495_v39 = vld [vmem:[#allocation4 + $0x218] sm:$0xff]  ;;  %v488_v45 = vld [vmem:[#allocation4 + $0x1e0] sm:$0xff] }
 0x2bb   :  { %2019 = vmatprep.subr.bf16.mxu1 %v493_v31  ;;  %v471_v40 = vpack.c.bf16 %v463_v38, %v462_v36  ;;  %v466_v41 = vld [vmem:[#allocation2 + $0x2] sm:$0xff]  ;;  %v467_v42 = vld [vmem:[#allocation2 + $0xa] sm:$0xff]  ;;  %v479_v44 = vld [vmem:[#allocation4 + $0x198] sm:$0xff] }
 0x2bc   :  { %1740 = vmatpush3.bf16.msra.mxu0 %v477_v32  ;;  %v472_v43 = vpack.c.bf16 %v467_v42, %v466_v41  ;;  %v496_v46 = vld [vmem:[#allocation4 + $0x220] sm:$0xff]  ;;  %v489_v48 = vld [vmem:[#allocation4 + $0x1e8] sm:$0xff]  ;;  %v490_v51 = vld [vmem:[#allocation4 + $0x1f0] sm:$0xff] }
 0x2bd   :  { %1741 = vmatprep.subr.bf16.mxu0 %v486_v33  ;;  %537 = vmatprep.mubr.bf16.mxu0 %v471_v40  ;;  %v480_v47 = vld [vmem:[#allocation4 + $0x1a0] sm:$0xff]  ;;  %v497_v49 = vld [vmem:[#allocation4 + $0x228] sm:$0xff]  ;;  %v498_v52 = vld [vmem:[#allocation4 + $0x230] sm:$0xff] }
 0x2be   :  { %2020 = vmatpush3.bf16.msra.mxu1 %v493_v31  ;;  %2033 = vmatprep.mubr.bf16.mxu1 %v472_v43  ;;  %v481_v50 = vld [vmem:[#allocation4 + $0x1a8] sm:$0xff]  ;;  %v482_v53 = vld [vmem:[#allocation4 + $0x1b0] sm:$0xff]  ;;  %v491_v54 = vld [vmem:[#allocation4 + $0x1f8] sm:$0xff] }
 0x2bf   :  { %2021 = vmatprep.subr.bf16.mxu1 %v494_v34  ;;  %v483_v55 = vld [vmem:[#allocation4 + $0x1b8] sm:$0xff]  ;;  %v458_v57 = vld [vmem:[#allocation2] sm:$0xff]  ;;  %v459_v58 = vld [vmem:[#allocation2 + $0x8] sm:$0xff] }
 0x2c0   :  { %1742 = vmatpush3.bf16.msra.mxu0 %v478_v35  ;;  %v499_v56 = vld [vmem:[#allocation4 + $0x238] sm:$0xff]  ;;  %v469_v63 = vld [vmem:[#allocation2 + $0x22] sm:$0xff]  ;;  %v470_v3 = vpack.c.bf16 %v459_v58, %v458_v57 }
 0x2c1   :  { %1743 = vmatprep.subr.bf16.mxu0 %v487_v37  ;;  %v468_v60 = vld [vmem:[#allocation2 + $0x1a] sm:$0xff]  ;;  %v1641_v16 = vld [vmem:[%s2729_s2 + $0x2] ss:$0 sm:$0xff] }
 0x2c2   :  { %2022 = vmatpush3.bf16.msra.mxu1 %v494_v34  ;;  %v464_v0 = vld [vmem:[#allocation2 + $0x19] sm:$0xff]  ;;  %v465_v2 = vld [vmem:[#allocation2 + $0x21] sm:$0xff]  ;;  %v475_v4 = vpack.c.bf16 %v469_v63, %v468_v60 }
 0x2c3   :  { %2023 = vmatprep.subr.bf16.mxu1 %v495_v39  ;;  %v474_v5 = vpack.c.bf16 %v465_v2, %v464_v0  ;;  %v460_v6 = vld [vmem:[#allocation2 + $0x18] sm:$0xff]  ;;  %v461_v8 = vld [vmem:[#allocation2 + $0x20] sm:$0xff] }
 0x2c4   :  { %1744 = vmatpush3.bf16.msra.mxu0 %v479_v44  ;;  %v473_v12 = vpack.c.bf16 %v461_v8, %v460_v6 }
 0x2c5   :  { %1745 = vmatprep.subr.bf16.mxu0 %v488_v45 }
 0x2c6   :  { %2024 = vmatpush3.bf16.msra.mxu1 %v495_v39 }
 0x2c7   :  { %2025 = vmatprep.subr.bf16.mxu1 %v496_v46 }
 0x2c8   :  { %1746 = vmatpush3.bf16.msra.mxu0 %v480_v47 }
 0x2c9   :  { %1747 = vmatprep.subr.bf16.mxu0 %v489_v48 }
 0x2ca   :  { %2026 = vmatpush3.bf16.msra.mxu1 %v496_v46 }
 0x2cb   :  { %2027 = vmatprep.subr.bf16.mxu1 %v497_v49 }
 0x2cc   :  { %1748 = vmatpush3.bf16.msra.mxu0 %v481_v50 }
 0x2cd   :  { %1749 = vmatprep.subr.bf16.mxu0 %v490_v51 }
 0x2ce   :  { %2028 = vmatpush3.bf16.msra.mxu1 %v497_v49 }
 0x2cf   :  { %2029 = vmatprep.subr.bf16.mxu1 %v498_v52 }
 0x2d0   :  { %1750 = vmatpush3.bf16.msra.mxu0 %v482_v53 }
 0x2d1   :  { %1751 = vmatprep.subr.bf16.mxu0 %v491_v54 }
 0x2d2   :  { %2030 = vmatpush3.bf16.msra.mxu1 %v498_v52 }
 0x2d3   :  { %2031 = vmatprep.subr.bf16.mxu1 %v499_v56 }
 0x2d4   :  { %1752 = vmatpush3.bf16.msra.mxu0 %v483_v55 }
 0x2d6   :  { %2032 = vmatpush3.bf16.msra.mxu1 %v499_v56 }
 0x2d7   :  { %538 = vmatmul.mubr.bf16.vlgmr.msra.gmra.mrb[16].mxu0 %v470_v3 }
 0x2d8   :  { %545 = vmatprep.mubr.bf16.mxu0 %v474_v5 }
 0x2d9   :  { %2034 = vmatmul.mubr.bf16.vlgmr.msra.gmra.mrb[8].mxu1 %v475_v4 }
 0x2df   :  { %546 = vmatmul.mubr.bf16.gmra.mrb[20].mxu0 %v473_v12 }
 0x3aa   :  { %v1753_v13 = vpop.f32.mrb[16].mxu0 }
 0x3ab   :  { %v1754_v14 = vpop.f32.mrb[17].mxu0 }
 0x3ac   :  { %v2035_v15 = vpop.f32.mrb[8].mxu1  ;;  %v1755_v17 = vadd.f32 %v1754_v14, %v1753_v13  ;;  %v1756_v18 = vpop.f32.mrb[18].mxu0 }
 0x3ad   :  { %v588_v19 = vpop.f32.mrb[9].mxu1  ;;  %v1757_v20 = vpop.f32.mrb[19].mxu0 }
 0x3ae   :  { %v2036_v21 = vpop.f32.mrb[10].mxu1  ;;  %v1758_v22 = vadd.f32 %v1757_v20, %v1756_v18  ;;  %v540_v23 = vadd.f32 %v1755_v17, %v1641_v16 }
 0x3af   :  { %v591_v24 = vpop.f32.mrb[11].mxu1 }
 0x3b0   :  { %v589_v25 = vadd.f32 %v588_v19, %v540_v23  ;;  %v543_v26 = vadd.f32 %v1758_v22, %v1641_v16 }
 0x3b2   :  { %v603_v27 = vadd.f32 %v589_v25, %v293_v61  ;;  %v592_v28 = vadd.f32 %v591_v24, %v543_v26  ;;  %v1759_v29 = vpop.f32.mrb[20].mxu0 }
 0x3b3   :  { %v1760_v30 = vpop.f32.mrb[21].mxu0 }
 0x3b4   :  { %v607_v31 = vmax.f32 %v603_v27, 0.0  ;;  %v604_v32 = vadd.f32 %v592_v28, %v294_v1  ;;  %v1761_v33 = vadd.f32 %v1760_v30, %v1759_v29  ;;  %v1762_v34 = vpop.f32.mrb[22].mxu0 }
 0x3b5   :  { %v1763_v35 = vpop.f32.mrb[23].mxu0 }
 0x3b6   :  { %611 = vst [vmem:[#allocation3 + $0x1] sm:$0xff] %v607_v31  ;;  %v608_v36 = vmax.f32 %v604_v32, 0.0  ;;  %v548_v37 = vadd.f32 %v1761_v33, %v1641_v16  ;;  %v1764_v38 = vadd.f32 %v1763_v35, %v1762_v34 }
 0x3b8   :  { %612 = vst [vmem:[#allocation3 + $0x9] sm:$0xff] %v608_v36  ;;  %v597_v39 = vadd.f32 %v2035_v15, %v548_v37  ;;  %v551_v40 = vadd.f32 %v1764_v38, %v1641_v16 }
 0x3ba   :  { %v605_v59 = vadd.f32 %v597_v39, %v295_v9  ;;  %v600_v61 = vadd.f32 %v2036_v21, %v551_v40 }
 0x3bc   :  { %v609_v41 = vmax.f32 %v605_v59, 0.0  ;;  %v606_v42 = vadd.f32 %v600_v61, %v296_v11 }
 0x3be   :  { %613 = vst [vmem:[#allocation3 + $0x19] sm:$0xff] %v609_v41  ;;  %v610_v62 = vmax.f32 %v606_v42, 0.0 }
 0x3c0   :  { %614 = vst [vmem:[#allocation3 + $0x21] sm:$0xff] %v610_v62 }
 0x3c1   :  { %2382 = dma.done.wait [#allocation5 + $0x3], 3072 }
 0x3c2   :  { %2383 = vsyncadd [#allocation5 + $0x3], 4294964224  ;;  %v643_v1 = vld [vmem:[#allocation4 + $0x280] sm:$0xff]  ;;  %v644_v44 = vld [vmem:[#allocation4 + $0x288] sm:$0xff]  ;;  %vm768_vm0 = vcmask 261120   ;;  %vm854_vm1 = vcmask 130048  }
 0x3c3   :  { %v635_v43 = vld [vmem:[#allocation4 + $0x240] sm:$0xff]  ;;  %1775 = vmatprep.subr.bf16.mxu0 %v643_v1  ;;  %v652_v46 = vld [vmem:[#allocation4 + $0x2c8] sm:$0xff]  ;;  %v645_v9 = vld [vmem:[#allocation4 + $0x290] sm:$0xff] }
 0x3c4   :  { %v651_v45 = vld [vmem:[#allocation4 + $0x2c0] sm:$0xff]  ;;  %1776 = vmatpush3.bf16.msra.mxu0 %v635_v43  ;;  %v636_v7 = vld [vmem:[#allocation4 + $0x248] sm:$0xff]  ;;  %v653_v10 = vld [vmem:[#allocation4 + $0x2d0] sm:$0xff] }
 0x3c5   :  { %2037 = vmatprep.subr.bf16.mxu1 %v651_v45  ;;  %1777 = vmatprep.subr.bf16.mxu0 %v644_v44  ;;  %v637_v11 = vld [vmem:[#allocation4 + $0x250] sm:$0xff]  ;;  %v646_v48 = vld [vmem:[#allocation4 + $0x298] sm:$0xff]  ;;  %v647_v56 = vld [vmem:[#allocation4 + $0x2a0] sm:$0xff] }
 0x3c6   :  { %2038 = vmatpush3.bf16.msra.mxu1 %v651_v45  ;;  %v621_v47 = vld [vmem:[#allocation3 + $0x1] sm:$0xff]  ;;  %v622_v49 = vld [vmem:[#allocation3 + $0x9] sm:$0xff]  ;;  %v648_v60 = vld [vmem:[#allocation4 + $0x2a8] sm:$0xff] }
 0x3c7   :  { %2039 = vmatprep.subr.bf16.mxu1 %v652_v46  ;;  %v654_v50 = vld [vmem:[#allocation4 + $0x2d8] sm:$0xff]  ;;  %v630_v51 = vpack.c.bf16 %v622_v49, %v621_v47  ;;  %v655_v57 = vld [vmem:[#allocation4 + $0x2e0] sm:$0xff]  ;;  %v656_v63 = vld [vmem:[#allocation4 + $0x2e8] sm:$0xff] }
 0x3c8   :  { %1778 = vmatpush3.bf16.msra.mxu0 %v636_v7  ;;  %v625_v52 = vld [vmem:[#allocation3 + $0x2] sm:$0xff]  ;;  %v626_v53 = vld [vmem:[#allocation3 + $0xa] sm:$0xff]  ;;  %v640_v0 = vld [vmem:[#allocation4 + $0x268] sm:$0xff] }
 0x3c9   :  { %1779 = vmatprep.subr.bf16.mxu0 %v645_v9  ;;  %v631_v54 = vpack.c.bf16 %v626_v53, %v625_v52  ;;  %v638_v55 = vld [vmem:[#allocation4 + $0x258] sm:$0xff]  ;;  %696 = vmatprep.mubr.bf16.mxu0 %v630_v51  ;;  %v639_v58 = vld [vmem:[#allocation4 + $0x260] sm:$0xff]  ;;  %v649_v2 = vld [vmem:[#allocation4 + $0x2b0] sm:$0xff] }
 0x3ca   :  { %2040 = vmatpush3.bf16.msra.mxu1 %v652_v46  ;;  %v657_v3 = vld [vmem:[#allocation4 + $0x2f0] sm:$0xff]  ;;  %v650_v5 = vld [vmem:[#allocation4 + $0x2b8] sm:$0xff]  ;;  %v619_v21 = vld [vmem:[#allocation3 + $0x18] sm:$0xff] }
 0x3cb   :  { %2041 = vmatprep.subr.bf16.mxu1 %v653_v10  ;;  %2053 = vmatprep.mubr.bf16.mxu1 %v631_v54  ;;  %v641_v4 = vld [vmem:[#allocation4 + $0x270] sm:$0xff]  ;;  %v642_v6 = vld [vmem:[#allocation4 + $0x278] sm:$0xff]  ;;  %v766_v24 = vld [vmem:[%s2730_s3] sm:$0xff] }
 0x3cc   :  { %1780 = vmatpush3.bf16.msra.mxu0 %v637_v11  ;;  %v658_v8 = vld [vmem:[#allocation4 + $0x2f8] sm:$0xff]  ;;  %v617_v12 = vld [vmem:[#allocation3] sm:$0xff]  ;;  %v1642_v28 = vld [vmem:[%s2729_s2 + $0x3] ss:$0 sm:$0xff] }
 0x3cd   :  { %1781 = vmatprep.subr.bf16.mxu0 %v646_v48  ;;  %v618_v13 = vld [vmem:[#allocation3 + $0x8] sm:$0xff]  ;;  %v627_v14 = vld [vmem:[#allocation3 + $0x1a] sm:$0xff]  ;;  %v850_v49 = vld [vmem:[%s2731_s4] sm:$0xff] }
 0x3ce   :  { %2042 = vmatpush3.bf16.msra.mxu1 %v653_v10  ;;  %v628_v15 = vld [vmem:[#allocation3 + $0x22] sm:$0xff]  ;;  %v623_v16 = vld [vmem:[#allocation3 + $0x19] sm:$0xff]  ;;  %v629_v18 = vpack.c.bf16 %v618_v13, %v617_v12 }
 0x3cf   :  { %2043 = vmatprep.subr.bf16.mxu1 %v654_v50  ;;  %v624_v17 = vld [vmem:[#allocation3 + $0x21] sm:$0xff]  ;;  %v634_v19 = vpack.c.bf16 %v628_v15, %v627_v14  ;;  %v767_v48 = vld [vmem:[%s2730_s3 + $0x8] sm:$0xff] }
 0x3d0   :  { %1782 = vmatpush3.bf16.msra.mxu0 %v638_v55  ;;  %v633_v20 = vpack.c.bf16 %v624_v17, %v623_v16  ;;  %v620_v22 = vld [vmem:[#allocation3 + $0x20] sm:$0xff]  ;;  %v851_v53 = vld [vmem:[%s2731_s4 + $0x8] sm:$0xff]  ;;  %v853_v55 = vld [vmem:[%s2731_s4 + $0x18] sm:$0xff] }
 0x3d1   :  { %1783 = vmatprep.subr.bf16.mxu0 %v647_v56  ;;  %v632_v23 = vpack.c.bf16 %v620_v22, %v619_v21  ;;  %v852_v54 = vld [vmem:[%s2731_s4 + $0x10] sm:$0xff] }
 0x3d2   :  { %2044 = vmatpush3.bf16.msra.mxu1 %v654_v50 }
 0x3d3   :  { %2045 = vmatprep.subr.bf16.mxu1 %v655_v57 }
 0x3d4   :  { %1784 = vmatpush3.bf16.msra.mxu0 %v639_v58 }
 0x3d5   :  { %1785 = vmatprep.subr.bf16.mxu0 %v648_v60 }
 0x3d6   :  { %2046 = vmatpush3.bf16.msra.mxu1 %v655_v57 }
 0x3d7   :  { %2047 = vmatprep.subr.bf16.mxu1 %v656_v63 }
 0x3d8   :  { %1786 = vmatpush3.bf16.msra.mxu0 %v640_v0 }
 0x3d9   :  { %1787 = vmatprep.subr.bf16.mxu0 %v649_v2 }
 0x3da   :  { %2048 = vmatpush3.bf16.msra.mxu1 %v656_v63 }
 0x3db   :  { %2049 = vmatprep.subr.bf16.mxu1 %v657_v3 }
 0x3dc   :  { %1788 = vmatpush3.bf16.msra.mxu0 %v641_v4 }
 0x3dd   :  { %1789 = vmatprep.subr.bf16.mxu0 %v650_v5 }
 0x3de   :  { %2050 = vmatpush3.bf16.msra.mxu1 %v657_v3 }
 0x3df   :  { %2051 = vmatprep.subr.bf16.mxu1 %v658_v8 }
 0x3e0   :  { %1790 = vmatpush3.bf16.msra.mxu0 %v642_v6 }
 0x3e2   :  { %2052 = vmatpush3.bf16.msra.mxu1 %v658_v8 }
 0x3e3   :  { %697 = vmatmul.mubr.bf16.vlgmr.msra.gmra.mrb[24].mxu0 %v629_v18 }
 0x3e4   :  { %704 = vmatprep.mubr.bf16.mxu0 %v633_v20 }
 0x3e5   :  { %2054 = vmatmul.mubr.bf16.vlgmr.msra.gmra.mrb[12].mxu1 %v634_v19 }
 0x3e6   :  { %2065 = vmatprep.mubr.msk.f32.mxu1 %vm768_vm0, %v766_v24 }
 0x3eb   :  { %705 = vmatmul.mubr.bf16.gmra.mrb[28].mxu0 %v632_v23 }
 0x4b6   :  { %v1791_v25 = vpop.f32.mrb[24].mxu0 }
 0x4b7   :  { %v1792_v26 = vpop.f32.mrb[25].mxu0 }
 0x4b8   :  { %v2055_v27 = vpop.f32.mrb[12].mxu1  ;;  %v1793_v29 = vadd.f32 %v1792_v26, %v1791_v25  ;;  %v1794_v30 = vpop.f32.mrb[26].mxu0 }
 0x4b9   :  { %v747_v31 = vpop.f32.mrb[13].mxu1  ;;  %v1795_v32 = vpop.f32.mrb[27].mxu0 }
 0x4ba   :  { %v2056_v33 = vpop.f32.mrb[14].mxu1  ;;  %v1796_v34 = vadd.f32 %v1795_v32, %v1794_v30  ;;  %v699_v35 = vadd.f32 %v1793_v29, %v1642_v28 }
 0x4bb   :  { %v750_v36 = vpop.f32.mrb[15].mxu1 }
 0x4bc   :  { %v748_v37 = vadd.f32 %v747_v31, %v699_v35  ;;  %v702_v38 = vadd.f32 %v1796_v34, %v1642_v28 }
 0x4be   :  { %v751_v39 = vadd.f32 %v750_v36, %v702_v38  ;;  %v1797_v40 = vpop.f32.mrb[28].mxu0  ;;  %v762_v61 = vmax.f32 %v748_v37, 0.0 }
 0x4bf   :  { %v1798_v59 = vpop.f32.mrb[29].mxu0 }
 0x4c0   :  { %v763_v41 = vmax.f32 %v751_v39, 0.0  ;;  %v1799_v42 = vadd.f32 %v1798_v59, %v1797_v40  ;;  %v1800_v62 = vpop.f32.mrb[30].mxu0 }
 0x4c1   :  { %v1801_v1 = vpop.f32.mrb[31].mxu0 }
 0x4c2   :  { %v2158_v43 = vpack.c.bf16 %v763_v41, %v762_v61  ;;  %v707_v44 = vadd.f32 %v1799_v42, %v1642_v28  ;;  %v1802_v45 = vadd.f32 %v1801_v1, %v1800_v62 }
 0x4c4   :  { %v756_v46 = vadd.f32 %v2055_v27, %v707_v44  ;;  %v710_v7 = vadd.f32 %v1802_v45, %v1642_v28  ;;  %2159 = vmatprep.subr.bf16.mxu1 %v2158_v43 }
 0x4c5   :  { %2161 = vmatpush3.bf16.msra.mxu1 %v2158_v43 }
 0x4c6   :  { %v759_v9 = vadd.f32 %v2056_v33, %v710_v7  ;;  %v764_v10 = vmax.f32 %v756_v46, 0.0 }
 0x4c8   :  { %v765_v11 = vmax.f32 %v759_v9, 0.0 }
 0x4ca   :  { %v2162_v47 = vpack.c.bf16 %v765_v11, %v764_v10 }
 0x4cc   :  { %2163 = vmatprep.subr.bf16.mxu1 %v2162_v47 }
 0x4cd   :  { %2165 = vmatpush3.bf16.msra.mxu1 %v2162_v47 }
 0x4d0   :  { %2066 = vmatmul.mubr.msk.f32.vlgmr.msra.gmra.mrb[16].mxu1 %vm768_vm0, %v767_v48 }
 0x4d1   :  { %2072 = vmatprep.mubr.msk.f32.mxu1 %vm854_vm1, %v850_v49 }
 0x5a3   :  { %v2659_v50 = vpop.f32.mrb[16].mxu1 }
 0x5a4   :  { %v2661_v51 = vpop.f32.mrb[17].mxu1 }
 0x5a5   :  { %v2166_v52 = vpack.c.bf16 %v2659_v50, %v2661_v51 }
 0x5a7   :  { %2167 = vmatprep.subr.bf16.mxu1 %v2166_v52 }
 0x5a8   :  { %2169 = vmatpush3.bf16.msra.mxu1 %v2166_v52 }
 0x5ab   :  { %2073 = vmatmul.mubr.msk.f32.vlgmr.msra.gmra.mrb[18].mxu1 %vm854_vm1, %v851_v53 }
 0x5ac   :  { %2075 = vmatprep.mubr.msk.f32.mxu1 %vm854_vm1, %v852_v54 }
 0x5af   :  { %2076 = vmatmul.mubr.msk.f32.gmra.mrb[20].mxu1 %vm854_vm1, %v853_v55 }
 0x67e   :  { %v2074_v56 = vpop.f32.mrb[18].mxu1 }
 0x67f   :  { %953 = vst [vmem:[#allocation2 + $0x9] sm:$0xff] %v2074_v56  ;;  %v933_v57 = vpop.f32.mrb[19].mxu1 }
 0x680   :  { %952 = vst [vmem:[#allocation2 + $0x1] sm:$0xff] %v933_v57 }
 0x682   :  { %v2077_v58 = vpop.f32.mrb[20].mxu1 }
 0x683   :  { %955 = vst [vmem:[#allocation2 + $0x21] sm:$0xff] %v2077_v58  ;;  %v943_v60 = vpop.f32.mrb[21].mxu1 }
 0x684   :  { %954 = vst [vmem:[#allocation2 + $0x19] sm:$0xff] %v943_v60 }
 0x685   :  { %2384 = dma.done.wait [#allocation5 + $0x4], 3072 }
 0x686   :  { %2385 = vsyncadd [#allocation5 + $0x4], 4294964224  ;;  %v984_v63 = vld [vmem:[#allocation4 + $0x340] sm:$0xff]  ;;  %v985_v2 = vld [vmem:[#allocation4 + $0x348] sm:$0xff] }
 0x687   :  { %v976_v0 = vld [vmem:[#allocation4 + $0x300] sm:$0xff]  ;;  %1825 = vmatprep.subr.bf16.mxu0 %v984_v63  ;;  %v993_v4 = vld [vmem:[#allocation4 + $0x388] sm:$0xff]  ;;  %v986_v6 = vld [vmem:[#allocation4 + $0x350] sm:$0xff] }
 0x688   :  { %v992_v3 = vld [vmem:[#allocation4 + $0x380] sm:$0xff]  ;;  %1826 = vmatpush3.bf16.msra.mxu0 %v976_v0  ;;  %v977_v5 = vld [vmem:[#allocation4 + $0x308] sm:$0xff]  ;;  %v994_v8 = vld [vmem:[#allocation4 + $0x390] sm:$0xff] }
 0x689   :  { %2078 = vmatprep.subr.bf16.mxu1 %v992_v3  ;;  %1827 = vmatprep.subr.bf16.mxu0 %v985_v2  ;;  %v978_v12 = vld [vmem:[#allocation4 + $0x310] sm:$0xff]  ;;  %v962_v13 = vld [vmem:[#allocation2 + $0x1] sm:$0xff]  ;;  %v987_v14 = vld [vmem:[#allocation4 + $0x358] sm:$0xff] }
 0x68a   :  { %2079 = vmatpush3.bf16.msra.mxu1 %v992_v3  ;;  %v963_v15 = vld [vmem:[#allocation2 + $0x9] sm:$0xff]  ;;  %v995_v16 = vld [vmem:[#allocation4 + $0x398] sm:$0xff]  ;;  %v988_v22 = vld [vmem:[#allocation4 + $0x360] sm:$0xff] }
 0x68b   :  { %2080 = vmatprep.subr.bf16.mxu1 %v993_v4  ;;  %v971_v17 = vpack.c.bf16 %v963_v15, %v962_v13  ;;  %v966_v18 = vld [vmem:[#allocation2 + $0x2] sm:$0xff]  ;;  %v967_v19 = vld [vmem:[#allocation2 + $0xa] sm:$0xff]  ;;  %v979_v21 = vld [vmem:[#allocation4 + $0x318] sm:$0xff] }
 0x68c   :  { %1828 = vmatpush3.bf16.msra.mxu0 %v977_v5  ;;  %v972_v20 = vpack.c.bf16 %v967_v19, %v966_v18  ;;  %v996_v23 = vld [vmem:[#allocation4 + $0x3a0] sm:$0xff]  ;;  %v989_v25 = vld [vmem:[#allocation4 + $0x368] sm:$0xff]  ;;  %v990_v28 = vld [vmem:[#allocation4 + $0x370] sm:$0xff] }
 0x68d   :  { %1829 = vmatprep.subr.bf16.mxu0 %v986_v6  ;;  %1037 = vmatprep.mubr.bf16.mxu0 %v971_v17  ;;  %v980_v24 = vld [vmem:[#allocation4 + $0x320] sm:$0xff]  ;;  %v997_v26 = vld [vmem:[#allocation4 + $0x3a8] sm:$0xff]  ;;  %v998_v29 = vld [vmem:[#allocation4 + $0x3b0] sm:$0xff] }
 0x68e   :  { %2081 = vmatpush3.bf16.msra.mxu1 %v993_v4  ;;  %2094 = vmatprep.mubr.bf16.mxu1 %v972_v20  ;;  %v981_v27 = vld [vmem:[#allocation4 + $0x328] sm:$0xff]  ;;  %v982_v30 = vld [vmem:[#allocation4 + $0x330] sm:$0xff]  ;;  %v991_v31 = vld [vmem:[#allocation4 + $0x378] sm:$0xff] }
 0x68f   :  { %2082 = vmatprep.subr.bf16.mxu1 %v994_v8  ;;  %v983_v32 = vld [vmem:[#allocation4 + $0x338] sm:$0xff]  ;;  %v958_v34 = vld [vmem:[#allocation2] sm:$0xff]  ;;  %v959_v35 = vld [vmem:[#allocation2 + $0x8] sm:$0xff] }
 0x690   :  { %1830 = vmatpush3.bf16.msra.mxu0 %v978_v12  ;;  %v999_v33 = vld [vmem:[#allocation4 + $0x3b8] sm:$0xff]  ;;  %v969_v37 = vld [vmem:[#allocation2 + $0x22] sm:$0xff]  ;;  %v970_v40 = vpack.c.bf16 %v959_v35, %v958_v34 }
 0x691   :  { %1831 = vmatprep.subr.bf16.mxu0 %v987_v14  ;;  %v968_v36 = vld [vmem:[#allocation2 + $0x1a] sm:$0xff]  ;;  %v1649_v45 = vld [vmem:[%s2729_s2 + $0x4] ss:$0 sm:$0xff] }
 0x692   :  { %2083 = vmatpush3.bf16.msra.mxu1 %v994_v8  ;;  %v964_v38 = vld [vmem:[#allocation2 + $0x19] sm:$0xff]  ;;  %v965_v39 = vld [vmem:[#allocation2 + $0x21] sm:$0xff]  ;;  %v975_v59 = vpack.c.bf16 %v969_v37, %v968_v36 }
 0x693   :  { %2084 = vmatprep.subr.bf16.mxu1 %v995_v16  ;;  %v974_v61 = vpack.c.bf16 %v965_v39, %v964_v38  ;;  %v960_v41 = vld [vmem:[#allocation2 + $0x18] sm:$0xff]  ;;  %v961_v42 = vld [vmem:[#allocation2 + $0x20] sm:$0xff] }
 0x694   :  { %1832 = vmatpush3.bf16.msra.mxu0 %v979_v21  ;;  %v973_v62 = vpack.c.bf16 %v961_v42, %v960_v41 }
 0x695   :  { %1833 = vmatprep.subr.bf16.mxu0 %v988_v22 }
 0x696   :  { %2085 = vmatpush3.bf16.msra.mxu1 %v995_v16 }
 0x697   :  { %2086 = vmatprep.subr.bf16.mxu1 %v996_v23 }
 0x698   :  { %1834 = vmatpush3.bf16.msra.mxu0 %v980_v24 }
 0x699   :  { %1835 = vmatprep.subr.bf16.mxu0 %v989_v25 }
 0x69a   :  { %2087 = vmatpush3.bf16.msra.mxu1 %v996_v23 }
 0x69b   :  { %2088 = vmatprep.subr.bf16.mxu1 %v997_v26 }
 0x69c   :  { %1836 = vmatpush3.bf16.msra.mxu0 %v981_v27 }
 0x69d   :  { %1837 = vmatprep.subr.bf16.mxu0 %v990_v28 }
 0x69e   :  { %2089 = vmatpush3.bf16.msra.mxu1 %v997_v26 }
 0x69f   :  { %2090 = vmatprep.subr.bf16.mxu1 %v998_v29 }
 0x6a0   :  { %1838 = vmatpush3.bf16.msra.mxu0 %v982_v30 }
 0x6a1   :  { %1839 = vmatprep.subr.bf16.mxu0 %v991_v31 }
 0x6a2   :  { %2091 = vmatpush3.bf16.msra.mxu1 %v998_v29 }
 0x6a3   :  { %2092 = vmatprep.subr.bf16.mxu1 %v999_v33 }
 0x6a4   :  { %1840 = vmatpush3.bf16.msra.mxu0 %v983_v32 }
 0x6a6   :  { %2093 = vmatpush3.bf16.msra.mxu1 %v999_v33 }
 0x6a7   :  { %1038 = vmatmul.mubr.bf16.vlgmr.msra.gmra.mrb[32].mxu0 %v970_v40 }
 0x6a8   :  { %1045 = vmatprep.mubr.bf16.mxu0 %v974_v61 }
 0x6a9   :  { %2095 = vmatmul.mubr.bf16.vlgmr.msra.gmra.mrb[24].mxu1 %v975_v59 }
 0x6af   :  { %1046 = vmatmul.mubr.bf16.gmra.mrb[36].mxu0 %v973_v62 }
 0x77a   :  { %v1841_v1 = vpop.f32.mrb[32].mxu0 }
 0x77b   :  { %v1842_v43 = vpop.f32.mrb[33].mxu0 }
 0x77c   :  { %v2096_v44 = vpop.f32.mrb[24].mxu1  ;;  %v1843_v46 = vadd.f32 %v1842_v43, %v1841_v1  ;;  %v1844_v7 = vpop.f32.mrb[34].mxu0 }
 0x77d   :  { %v1088_v9 = vpop.f32.mrb[25].mxu1  ;;  %v1845_v10 = vpop.f32.mrb[35].mxu0 }
 0x77e   :  { %v2097_v11 = vpop.f32.mrb[26].mxu1  ;;  %v1846_v47 = vadd.f32 %v1845_v10, %v1844_v7  ;;  %v1040_v48 = vadd.f32 %v1843_v46, %v1649_v45 }
 0x77f   :  { %v1091_v49 = vpop.f32.mrb[27].mxu1 }
 0x780   :  { %v2677_v52 = vadd.f32 %v1088_v9, %v1040_v48  ;;  %v1043_v53 = vadd.f32 %v1846_v47, %v1649_v45 }
 0x782   :  { %v1103_v54 = vmax.f32 %v2677_v52, 0.0  ;;  %v2680_v55 = vadd.f32 %v1091_v49, %v1043_v53  ;;  %v1847_v56 = vpop.f32.mrb[36].mxu0 }
 0x783   :  { %v1848_v57 = vpop.f32.mrb[37].mxu0 }
 0x784   :  { %1107 = vst [vmem:[#allocation3 + $0x1] sm:$0xff] %v1103_v54  ;;  %v1104_v58 = vmax.f32 %v2680_v55, 0.0  ;;  %v1849_v60 = vadd.f32 %v1848_v57, %v1847_v56  ;;  %v1850_v63 = vpop.f32.mrb[38].mxu0 }
 0x785   :  { %v1851_v0 = vpop.f32.mrb[39].mxu0 }
 0x786   :  { %1108 = vst [vmem:[#allocation3 + $0x9] sm:$0xff] %v1104_v58  ;;  %v1048_v2 = vadd.f32 %v1849_v60, %v1649_v45  ;;  %v1852_v3 = vadd.f32 %v1851_v0, %v1850_v63 }
 0x788   :  { %v2687_v4 = vadd.f32 %v2096_v44, %v1048_v2  ;;  %v1051_v5 = vadd.f32 %v1852_v3, %v1649_v45 }
 0x78a   :  { %v1105_v6 = vmax.f32 %v2687_v4, 0.0  ;;  %v2690_v8 = vadd.f32 %v2097_v11, %v1051_v5 }
 0x78c   :  { %1109 = vst [vmem:[#allocation3 + $0x19] sm:$0xff] %v1105_v6  ;;  %v1106_v12 = vmax.f32 %v2690_v8, 0.0 }
 0x78e   :  { %1110 = vst [vmem:[#allocation3 + $0x21] sm:$0xff] %v1106_v12 }
 0x78f   :  { %2386 = dma.done.wait [#allocation5 + $0x5], 3072 }
 0x790   :  { %2387 = vsyncadd [#allocation5 + $0x5], 4294964224  ;;  %v1139_v13 = vld [vmem:[#allocation4 + $0x400] sm:$0xff]  ;;  %v1140_v15 = vld [vmem:[#allocation4 + $0x408] sm:$0xff] }
 0x791   :  { %v1131_v14 = vld [vmem:[#allocation4 + $0x3c0] sm:$0xff]  ;;  %1863 = vmatprep.subr.bf16.mxu0 %v1139_v13  ;;  %v1148_v17 = vld [vmem:[#allocation4 + $0x448] sm:$0xff]  ;;  %v1141_v19 = vld [vmem:[#allocation4 + $0x410] sm:$0xff] }
 0x792   :  { %v1147_v16 = vld [vmem:[#allocation4 + $0x440] sm:$0xff]  ;;  %1864 = vmatpush3.bf16.msra.mxu0 %v1131_v14  ;;  %v1132_v18 = vld [vmem:[#allocation4 + $0x3c8] sm:$0xff]  ;;  %v1149_v20 = vld [vmem:[#allocation4 + $0x450] sm:$0xff] }
 0x793   :  { %2098 = vmatprep.subr.bf16.mxu1 %v1147_v16  ;;  %1865 = vmatprep.subr.bf16.mxu0 %v1140_v15  ;;  %v1133_v21 = vld [vmem:[#allocation4 + $0x3d0] sm:$0xff]  ;;  %v1142_v23 = vld [vmem:[#allocation4 + $0x418] sm:$0xff]  ;;  %v1143_v31 = vld [vmem:[#allocation4 + $0x420] sm:$0xff] }
 0x794   :  { %2099 = vmatpush3.bf16.msra.mxu1 %v1147_v16  ;;  %v1117_v22 = vld [vmem:[#allocation3 + $0x1] sm:$0xff]  ;;  %v1118_v24 = vld [vmem:[#allocation3 + $0x9] sm:$0xff]  ;;  %v1144_v34 = vld [vmem:[#allocation4 + $0x428] sm:$0xff] }
 0x795   :  { %2100 = vmatprep.subr.bf16.mxu1 %v1148_v17  ;;  %v1150_v25 = vld [vmem:[#allocation4 + $0x458] sm:$0xff]  ;;  %v1126_v26 = vpack.c.bf16 %v1118_v24, %v1117_v22  ;;  %v1151_v32 = vld [vmem:[#allocation4 + $0x460] sm:$0xff]  ;;  %v1152_v35 = vld [vmem:[#allocation4 + $0x468] sm:$0xff] }
 0x796   :  { %1866 = vmatpush3.bf16.msra.mxu0 %v1132_v18  ;;  %v1121_v27 = vld [vmem:[#allocation3 + $0x2] sm:$0xff]  ;;  %v1122_v28 = vld [vmem:[#allocation3 + $0xa] sm:$0xff]  ;;  %v1136_v36 = vld [vmem:[#allocation4 + $0x3e8] sm:$0xff] }
 0x797   :  { %1867 = vmatprep.subr.bf16.mxu0 %v1141_v19  ;;  %v1127_v29 = vpack.c.bf16 %v1122_v28, %v1121_v27  ;;  %v1134_v30 = vld [vmem:[#allocation4 + $0x3d8] sm:$0xff]  ;;  %1192 = vmatprep.mubr.bf16.mxu0 %v1126_v26  ;;  %v1135_v33 = vld [vmem:[#allocation4 + $0x3e0] sm:$0xff]  ;;  %v1145_v37 = vld [vmem:[#allocation4 + $0x430] sm:$0xff] }
 0x798   :  { %2101 = vmatpush3.bf16.msra.mxu1 %v1148_v17  ;;  %v1153_v38 = vld [vmem:[#allocation4 + $0x470] sm:$0xff]  ;;  %v1146_v40 = vld [vmem:[#allocation4 + $0x438] sm:$0xff]  ;;  %v1115_v9 = vld [vmem:[#allocation3 + $0x18] sm:$0xff] }
 0x799   :  { %2102 = vmatprep.subr.bf16.mxu1 %v1149_v20  ;;  %2114 = vmatprep.mubr.bf16.mxu1 %v1127_v29  ;;  %v1137_v39 = vld [vmem:[#allocation4 + $0x3f0] sm:$0xff]  ;;  %v1138_v59 = vld [vmem:[#allocation4 + $0x3f8] sm:$0xff]  ;;  %v1650_v53 = vld [vmem:[%s2729_s2 + $0x5] ss:$0 sm:$0xff] }
 0x79a   :  { %1868 = vmatpush3.bf16.msra.mxu0 %v1133_v21  ;;  %v1154_v61 = vld [vmem:[#allocation4 + $0x478] sm:$0xff]  ;;  %v1113_v41 = vld [vmem:[#allocation3] sm:$0xff] }
 0x79b   :  { %1869 = vmatprep.subr.bf16.mxu0 %v1142_v23  ;;  %v1114_v42 = vld [vmem:[#allocation3 + $0x8] sm:$0xff]  ;;  %v1123_v62 = vld [vmem:[#allocation3 + $0x1a] sm:$0xff] }
 0x79c   :  { %2103 = vmatpush3.bf16.msra.mxu1 %v1149_v20  ;;  %v1124_v1 = vld [vmem:[#allocation3 + $0x22] sm:$0xff]  ;;  %v1119_v43 = vld [vmem:[#allocation3 + $0x19] sm:$0xff]  ;;  %v1125_v45 = vpack.c.bf16 %v1114_v42, %v1113_v41 }
 0x79d   :  { %2104 = vmatprep.subr.bf16.mxu1 %v1150_v25  ;;  %v1120_v44 = vld [vmem:[#allocation3 + $0x21] sm:$0xff]  ;;  %v1130_v46 = vpack.c.bf16 %v1124_v1, %v1123_v62 }
 0x79e   :  { %1870 = vmatpush3.bf16.msra.mxu0 %v1134_v30  ;;  %v1129_v7 = vpack.c.bf16 %v1120_v44, %v1119_v43  ;;  %v1116_v10 = vld [vmem:[#allocation3 + $0x20] sm:$0xff] }
 0x79f   :  { %1871 = vmatprep.subr.bf16.mxu0 %v1143_v31  ;;  %v1128_v11 = vpack.c.bf16 %v1116_v10, %v1115_v9 }
 0x7a0   :  { %2105 = vmatpush3.bf16.msra.mxu1 %v1150_v25 }
 0x7a1   :  { %2106 = vmatprep.subr.bf16.mxu1 %v1151_v32 }
 0x7a2   :  { %1872 = vmatpush3.bf16.msra.mxu0 %v1135_v33 }
 0x7a3   :  { %1873 = vmatprep.subr.bf16.mxu0 %v1144_v34 }
 0x7a4   :  { %2107 = vmatpush3.bf16.msra.mxu1 %v1151_v32 }
 0x7a5   :  { %2108 = vmatprep.subr.bf16.mxu1 %v1152_v35 }
 0x7a6   :  { %1874 = vmatpush3.bf16.msra.mxu0 %v1136_v36 }
 0x7a7   :  { %1875 = vmatprep.subr.bf16.mxu0 %v1145_v37 }
 0x7a8   :  { %2109 = vmatpush3.bf16.msra.mxu1 %v1152_v35 }
 0x7a9   :  { %2110 = vmatprep.subr.bf16.mxu1 %v1153_v38 }
 0x7aa   :  { %1876 = vmatpush3.bf16.msra.mxu0 %v1137_v39 }
 0x7ab   :  { %1877 = vmatprep.subr.bf16.mxu0 %v1146_v40 }
 0x7ac   :  { %2111 = vmatpush3.bf16.msra.mxu1 %v1153_v38 }
 0x7ad   :  { %2112 = vmatprep.subr.bf16.mxu1 %v1154_v61 }
 0x7ae   :  { %1878 = vmatpush3.bf16.msra.mxu0 %v1138_v59 }
 0x7b0   :  { %2113 = vmatpush3.bf16.msra.mxu1 %v1154_v61 }
 0x7b1   :  { %1193 = vmatmul.mubr.bf16.vlgmr.msra.gmra.mrb[40].mxu0 %v1125_v45 }
 0x7b2   :  { %1200 = vmatprep.mubr.bf16.mxu0 %v1129_v7 }
 0x7b3   :  { %2115 = vmatmul.mubr.bf16.vlgmr.msra.gmra.mrb[28].mxu1 %v1130_v46 }
 0x7b9   :  { %1201 = vmatmul.mubr.bf16.gmra.mrb[44].mxu0 %v1128_v11 }
 0x884   :  { %v1879_v47 = vpop.f32.mrb[40].mxu0 }
 0x885   :  { %v1880_v48 = vpop.f32.mrb[41].mxu0 }
 0x886   :  { %v2116_v49 = vpop.f32.mrb[28].mxu1  ;;  %v1881_v56 = vadd.f32 %v1880_v48, %v1879_v47  ;;  %v1882_v57 = vpop.f32.mrb[42].mxu0 }
 0x887   :  { %v1243_v60 = vpop.f32.mrb[29].mxu1  ;;  %v1883_v63 = vpop.f32.mrb[43].mxu0 }
 0x888   :  { %v2117_v0 = vpop.f32.mrb[30].mxu1  ;;  %v1884_v2 = vadd.f32 %v1883_v63, %v1882_v57  ;;  %v1195_v3 = vadd.f32 %v1881_v56, %v1650_v53 }
 0x889   :  { %v1246_v5 = vpop.f32.mrb[31].mxu1 }
 0x88a   :  { %v1244_v13 = vadd.f32 %v1243_v60, %v1195_v3  ;;  %v1198_v14 = vadd.f32 %v1884_v2, %v1650_v53 }
 0x88c   :  { %v1258_v15 = vmax.f32 %v1244_v13, 0.0  ;;  %v1247_v16 = vadd.f32 %v1246_v5, %v1198_v14  ;;  %v1885_v17 = vpop.f32.mrb[44].mxu0 }
 0x88d   :  { %v1886_v18 = vpop.f32.mrb[45].mxu0 }
 0x88e   :  { %1262 = vst [vmem:[#allocation2 + $0x1] sm:$0xff] %v1258_v15  ;;  %v1259_v19 = vmax.f32 %v1247_v16, 0.0  ;;  %v1887_v20 = vadd.f32 %v1886_v18, %v1885_v17  ;;  %v1888_v21 = vpop.f32.mrb[46].mxu0 }
 0x88f   :  { %v1889_v22 = vpop.f32.mrb[47].mxu0 }
 0x890   :  { %1263 = vst [vmem:[#allocation2 + $0x9] sm:$0xff] %v1259_v19  ;;  %v1203_v23 = vadd.f32 %v1887_v20, %v1650_v53  ;;  %v1890_v24 = vadd.f32 %v1889_v22, %v1888_v21 }
 0x892   :  { %v1252_v25 = vadd.f32 %v2116_v49, %v1203_v23  ;;  %v1206_v26 = vadd.f32 %v1890_v24, %v1650_v53 }
 0x894   :  { %v1260_v27 = vmax.f32 %v1252_v25, 0.0  ;;  %v1255_v28 = vadd.f32 %v2117_v0, %v1206_v26 }
 0x896   :  { %1264 = vst [vmem:[#allocation2 + $0x19] sm:$0xff] %v1260_v27  ;;  %v1261_v29 = vmax.f32 %v1255_v28, 0.0 }
 0x898   :  { %1265 = vst [vmem:[#allocation2 + $0x21] sm:$0xff] %v1261_v29 }
 0x899   :  { %2388 = dma.done.wait [#allocation5 + $0x6], 3072 }
 0x89a   :  { %2389 = vsyncadd [#allocation5 + $0x6], 4294964224  ;;  %v1294_v30 = vld [vmem:[#allocation4 + $0x4c0] sm:$0xff]  ;;  %v1295_v32 = vld [vmem:[#allocation4 + $0x4c8] sm:$0xff] }
 0x89b   :  { %v1286_v31 = vld [vmem:[#allocation4 + $0x480] sm:$0xff]  ;;  %1901 = vmatprep.subr.bf16.mxu0 %v1294_v30  ;;  %v1303_v34 = vld [vmem:[#allocation4 + $0x508] sm:$0xff]  ;;  %v1296_v36 = vld [vmem:[#allocation4 + $0x4d0] sm:$0xff] }
 0x89c   :  { %v1302_v33 = vld [vmem:[#allocation4 + $0x500] sm:$0xff]  ;;  %1902 = vmatpush3.bf16.msra.mxu0 %v1286_v31  ;;  %v1287_v35 = vld [vmem:[#allocation4 + $0x488] sm:$0xff]  ;;  %v1304_v37 = vld [vmem:[#allocation4 + $0x510] sm:$0xff] }
 0x89d   :  { %2118 = vmatprep.subr.bf16.mxu1 %v1302_v33  ;;  %1903 = vmatprep.subr.bf16.mxu0 %v1295_v32  ;;  %v1288_v38 = vld [vmem:[#allocation4 + $0x490] sm:$0xff]  ;;  %v1272_v39 = vld [vmem:[#allocation2 + $0x1] sm:$0xff]  ;;  %v1297_v40 = vld [vmem:[#allocation4 + $0x4d8] sm:$0xff] }
 0x89e   :  { %2119 = vmatpush3.bf16.msra.mxu1 %v1302_v33  ;;  %v1273_v59 = vld [vmem:[#allocation2 + $0x9] sm:$0xff]  ;;  %v1305_v61 = vld [vmem:[#allocation4 + $0x518] sm:$0xff]  ;;  %v1298_v44 = vld [vmem:[#allocation4 + $0x4e0] sm:$0xff] }
 0x89f   :  { %2120 = vmatprep.subr.bf16.mxu1 %v1303_v34  ;;  %v1281_v41 = vpack.c.bf16 %v1273_v59, %v1272_v39  ;;  %v1276_v42 = vld [vmem:[#allocation2 + $0x2] sm:$0xff]  ;;  %v1277_v62 = vld [vmem:[#allocation2 + $0xa] sm:$0xff]  ;;  %v1289_v43 = vld [vmem:[#allocation4 + $0x498] sm:$0xff] }
 0x8a0   :  { %1904 = vmatpush3.bf16.msra.mxu0 %v1287_v35  ;;  %v1282_v1 = vpack.c.bf16 %v1277_v62, %v1276_v42  ;;  %v1306_v45 = vld [vmem:[#allocation4 + $0x520] sm:$0xff]  ;;  %v1299_v7 = vld [vmem:[#allocation4 + $0x4e8] sm:$0xff]  ;;  %v1300_v11 = vld [vmem:[#allocation4 + $0x4f0] sm:$0xff] }
 0x8a1   :  { %1905 = vmatprep.subr.bf16.mxu0 %v1296_v36  ;;  %1347 = vmatprep.mubr.bf16.mxu0 %v1281_v41  ;;  %v1290_v46 = vld [vmem:[#allocation4 + $0x4a0] sm:$0xff]  ;;  %v1307_v9 = vld [vmem:[#allocation4 + $0x528] sm:$0xff]  ;;  %v1308_v47 = vld [vmem:[#allocation4 + $0x530] sm:$0xff] }
 0x8a2   :  { %2121 = vmatpush3.bf16.msra.mxu1 %v1303_v34  ;;  %2134 = vmatprep.mubr.bf16.mxu1 %v1282_v1  ;;  %v1291_v10 = vld [vmem:[#allocation4 + $0x4a8] sm:$0xff]  ;;  %v1292_v48 = vld [vmem:[#allocation4 + $0x4b0] sm:$0xff]  ;;  %v1301_v49 = vld [vmem:[#allocation4 + $0x4f8] sm:$0xff] }
 0x8a3   :  { %2122 = vmatprep.subr.bf16.mxu1 %v1304_v37  ;;  %v1293_v53 = vld [vmem:[#allocation4 + $0x4b8] sm:$0xff]  ;;  %v1268_v57 = vld [vmem:[#allocation2] sm:$0xff]  ;;  %v1269_v60 = vld [vmem:[#allocation2 + $0x8] sm:$0xff] }
 0x8a4   :  { %1906 = vmatpush3.bf16.msra.mxu0 %v1288_v38  ;;  %v1309_v56 = vld [vmem:[#allocation4 + $0x538] sm:$0xff]  ;;  %v1279_v0 = vld [vmem:[#allocation2 + $0x22] sm:$0xff]  ;;  %v1280_v5 = vpack.c.bf16 %v1269_v60, %v1268_v57 }
 0x8a5   :  { %1907 = vmatprep.subr.bf16.mxu0 %v1297_v40  ;;  %v1278_v63 = vld [vmem:[#allocation2 + $0x1a] sm:$0xff]  ;;  %v1651_v21 = vld [vmem:[%s2729_s2 + $0x6] ss:$0 sm:$0xff] }
 0x8a6   :  { %2123 = vmatpush3.bf16.msra.mxu1 %v1304_v37  ;;  %v1274_v2 = vld [vmem:[#allocation2 + $0x19] sm:$0xff]  ;;  %v1275_v3 = vld [vmem:[#allocation2 + $0x21] sm:$0xff]  ;;  %v1285_v13 = vpack.c.bf16 %v1279_v0, %v1278_v63 }
 0x8a7   :  { %2124 = vmatprep.subr.bf16.mxu1 %v1305_v61  ;;  %v1284_v14 = vpack.c.bf16 %v1275_v3, %v1274_v2  ;;  %v1270_v15 = vld [vmem:[#allocation2 + $0x18] sm:$0xff]  ;;  %v1271_v16 = vld [vmem:[#allocation2 + $0x20] sm:$0xff] }
 0x8a8   :  { %1908 = vmatpush3.bf16.msra.mxu0 %v1289_v43  ;;  %v1283_v17 = vpack.c.bf16 %v1271_v16, %v1270_v15 }
 0x8a9   :  { %1909 = vmatprep.subr.bf16.mxu0 %v1298_v44 }
 0x8aa   :  { %2125 = vmatpush3.bf16.msra.mxu1 %v1305_v61 }
 0x8ab   :  { %2126 = vmatprep.subr.bf16.mxu1 %v1306_v45 }
 0x8ac   :  { %1910 = vmatpush3.bf16.msra.mxu0 %v1290_v46 }
 0x8ad   :  { %1911 = vmatprep.subr.bf16.mxu0 %v1299_v7 }
 0x8ae   :  { %2127 = vmatpush3.bf16.msra.mxu1 %v1306_v45 }
 0x8af   :  { %2128 = vmatprep.subr.bf16.mxu1 %v1307_v9 }
 0x8b0   :  { %1912 = vmatpush3.bf16.msra.mxu0 %v1291_v10 }
 0x8b1   :  { %1913 = vmatprep.subr.bf16.mxu0 %v1300_v11 }
 0x8b2   :  { %2129 = vmatpush3.bf16.msra.mxu1 %v1307_v9 }
 0x8b3   :  { %2130 = vmatprep.subr.bf16.mxu1 %v1308_v47 }
 0x8b4   :  { %1914 = vmatpush3.bf16.msra.mxu0 %v1292_v48 }
 0x8b5   :  { %1915 = vmatprep.subr.bf16.mxu0 %v1301_v49 }
 0x8b6   :  { %2131 = vmatpush3.bf16.msra.mxu1 %v1308_v47 }
 0x8b7   :  { %2132 = vmatprep.subr.bf16.mxu1 %v1309_v56 }
 0x8b8   :  { %1916 = vmatpush3.bf16.msra.mxu0 %v1293_v53 }
 0x8ba   :  { %2133 = vmatpush3.bf16.msra.mxu1 %v1309_v56 }
 0x8bb   :  { %1348 = vmatmul.mubr.bf16.vlgmr.msra.gmra.mrb[48].mxu0 %v1280_v5 }
 0x8bc   :  { %1355 = vmatprep.mubr.bf16.mxu0 %v1284_v14 }
 0x8bd   :  { %2135 = vmatmul.mubr.bf16.vlgmr.msra.gmra.mrb[32].mxu1 %v1285_v13 }
 0x8c3   :  { %1356 = vmatmul.mubr.bf16.gmra.mrb[52].mxu0 %v1283_v17 }
 0x98e   :  { %v1917_v18 = vpop.f32.mrb[48].mxu0 }
 0x98f   :  { %v1918_v19 = vpop.f32.mrb[49].mxu0 }
 0x990   :  { %v2136_v20 = vpop.f32.mrb[32].mxu1  ;;  %v1919_v22 = vadd.f32 %v1918_v19, %v1917_v18  ;;  %v1920_v23 = vpop.f32.mrb[50].mxu0 }
 0x991   :  { %v1398_v24 = vpop.f32.mrb[33].mxu1  ;;  %v1921_v25 = vpop.f32.mrb[51].mxu0 }
 0x992   :  { %v2137_v26 = vpop.f32.mrb[34].mxu1  ;;  %v1922_v27 = vadd.f32 %v1921_v25, %v1920_v23  ;;  %v1350_v28 = vadd.f32 %v1919_v22, %v1651_v21 }
 0x993   :  { %v1401_v29 = vpop.f32.mrb[35].mxu1 }
 0x994   :  { %v1399_v30 = vadd.f32 %v1398_v24, %v1350_v28  ;;  %v1353_v31 = vadd.f32 %v1922_v27, %v1651_v21 }
 0x996   :  { %v1413_v32 = vadd.f32 %v1399_v30, %v1103_v54  ;;  %v1402_v33 = vadd.f32 %v1401_v29, %v1353_v31  ;;  %v1923_v34 = vpop.f32.mrb[52].mxu0 }
 0x997   :  { %v1924_v35 = vpop.f32.mrb[53].mxu0 }
 0x998   :  { %v1417_v36 = vmax.f32 %v1413_v32, 0.0  ;;  %v1414_v37 = vadd.f32 %v1402_v33, %v1104_v58  ;;  %v1925_v38 = vadd.f32 %v1924_v35, %v1923_v34  ;;  %v1926_v39 = vpop.f32.mrb[54].mxu0 }
 0x999   :  { %v1927_v40 = vpop.f32.mrb[55].mxu0 }
 0x99a   :  { %1421 = vst [vmem:[#allocation3 + $0x1] sm:$0xff] %v1417_v36  ;;  %v1418_v59 = vmax.f32 %v1414_v37, 0.0  ;;  %v1358_v61 = vadd.f32 %v1925_v38, %v1651_v21  ;;  %v1928_v41 = vadd.f32 %v1927_v40, %v1926_v39 }
 0x99c   :  { %1422 = vst [vmem:[#allocation3 + $0x9] sm:$0xff] %v1418_v59  ;;  %v1407_v42 = vadd.f32 %v2136_v20, %v1358_v61  ;;  %v1361_v62 = vadd.f32 %v1928_v41, %v1651_v21 }
 0x99e   :  { %v1415_v52 = vadd.f32 %v1407_v42, %v1105_v6  ;;  %v1410_v54 = vadd.f32 %v2137_v26, %v1361_v62 }
 0x9a0   :  { %v1419_v1 = vmax.f32 %v1415_v52, 0.0  ;;  %v1416_v43 = vadd.f32 %v1410_v54, %v1106_v12 }
 0x9a2   :  { %1423 = vst [vmem:[#allocation3 + $0x19] sm:$0xff] %v1419_v1  ;;  %v1420_v55 = vmax.f32 %v1416_v43, 0.0 }
 0x9a4   :  { %1424 = vst [vmem:[#allocation3 + $0x21] sm:$0xff] %v1420_v55 }
 0x9a5   :  { %2390 = dma.done.wait [#allocation5 + $0x7], 3072 }
 0x9a6   :  { %2391 = vsyncadd [#allocation5 + $0x7], 4294964224  ;;  %v1453_v58 = vld [vmem:[#allocation4 + $0x580] sm:$0xff]  ;;  %v1454_v45 = vld [vmem:[#allocation4 + $0x588] sm:$0xff] }
 0x9a7   :  { %v1445_v44 = vld [vmem:[#allocation4 + $0x540] sm:$0xff]  ;;  %1939 = vmatprep.subr.bf16.mxu0 %v1453_v58  ;;  %v1462_v7 = vld [vmem:[#allocation4 + $0x5c8] sm:$0xff]  ;;  %v1455_v6 = vld [vmem:[#allocation4 + $0x590] sm:$0xff] }
 0x9a8   :  { %v1461_v46 = vld [vmem:[#allocation4 + $0x5c0] sm:$0xff]  ;;  %1940 = vmatpush3.bf16.msra.mxu0 %v1445_v44  ;;  %v1446_v4 = vld [vmem:[#allocation4 + $0x548] sm:$0xff]  ;;  %v1463_v8 = vld [vmem:[#allocation4 + $0x5d0] sm:$0xff] }
 0x9a9   :  { %2138 = vmatprep.subr.bf16.mxu1 %v1461_v46  ;;  %1941 = vmatprep.subr.bf16.mxu0 %v1454_v45  ;;  %v1447_v12 = vld [vmem:[#allocation4 + $0x550] sm:$0xff]  ;;  %v1456_v10 = vld [vmem:[#allocation4 + $0x598] sm:$0xff]  ;;  %v1457_v60 = vld [vmem:[#allocation4 + $0x5a0] sm:$0xff] }
 0x9aa   :  { %2139 = vmatpush3.bf16.msra.mxu1 %v1461_v46  ;;  %v1431_v9 = vld [vmem:[#allocation3 + $0x1] sm:$0xff]  ;;  %v1432_v11 = vld [vmem:[#allocation3 + $0x9] sm:$0xff]  ;;  %v1458_v2 = vld [vmem:[#allocation4 + $0x5a8] sm:$0xff] }
 0x9ab   :  { %2140 = vmatprep.subr.bf16.mxu1 %v1462_v7  ;;  %v1464_v47 = vld [vmem:[#allocation4 + $0x5d8] sm:$0xff]  ;;  %v1440_v48 = vpack.c.bf16 %v1432_v11, %v1431_v9  ;;  %v1465_v63 = vld [vmem:[#allocation4 + $0x5e0] sm:$0xff]  ;;  %v1466_v3 = vld [vmem:[#allocation4 + $0x5e8] sm:$0xff] }
 0x9ac   :  { %1942 = vmatpush3.bf16.msra.mxu0 %v1446_v4  ;;  %v1435_v49 = vld [vmem:[#allocation3 + $0x2] sm:$0xff]  ;;  %v1436_v53 = vld [vmem:[#allocation3 + $0xa] sm:$0xff]  ;;  %v1450_v5 = vld [vmem:[#allocation4 + $0x568] sm:$0xff] }
 0x9ad   :  { %1943 = vmatprep.subr.bf16.mxu0 %v1455_v6  ;;  %v1441_v56 = vpack.c.bf16 %v1436_v53, %v1435_v49  ;;  %v1448_v57 = vld [vmem:[#allocation4 + $0x558] sm:$0xff]  ;;  %1506 = vmatprep.mubr.bf16.mxu0 %v1440_v48  ;;  %v1449_v0 = vld [vmem:[#allocation4 + $0x560] sm:$0xff]  ;;  %v1459_v13 = vld [vmem:[#allocation4 + $0x5b0] sm:$0xff] }
 0x9ae   :  { %2141 = vmatpush3.bf16.msra.mxu1 %v1462_v7  ;;  %v1467_v14 = vld [vmem:[#allocation4 + $0x5f0] sm:$0xff]  ;;  %v1460_v16 = vld [vmem:[#allocation4 + $0x5b8] sm:$0xff]  ;;  %v1429_v28 = vld [vmem:[#allocation3 + $0x18] sm:$0xff] }
 0x9af   :  { %2142 = vmatprep.subr.bf16.mxu1 %v1463_v8  ;;  %2154 = vmatprep.mubr.bf16.mxu1 %v1441_v56  ;;  %v1451_v15 = vld [vmem:[#allocation4 + $0x570] sm:$0xff]  ;;  %v1452_v17 = vld [vmem:[#allocation4 + $0x578] sm:$0xff]  ;;  %v1652_v34 = vld [vmem:[%s2729_s2 + $0x7] ss:$0 sm:$0xff] }
 0x9b0   :  { %1944 = vmatpush3.bf16.msra.mxu0 %v1447_v12  ;;  %v1468_v18 = vld [vmem:[#allocation4 + $0x5f8] sm:$0xff]  ;;  %v1427_v19 = vld [vmem:[#allocation3] sm:$0xff] }
 0x9b1   :  { %1945 = vmatprep.subr.bf16.mxu0 %v1456_v10  ;;  %v1428_v20 = vld [vmem:[#allocation3 + $0x8] sm:$0xff]  ;;  %v1437_v21 = vld [vmem:[#allocation3 + $0x1a] sm:$0xff] }
 0x9b2   :  { %2143 = vmatpush3.bf16.msra.mxu1 %v1463_v8  ;;  %v1438_v22 = vld [vmem:[#allocation3 + $0x22] sm:$0xff]  ;;  %v1433_v23 = vld [vmem:[#allocation3 + $0x19] sm:$0xff]  ;;  %v1439_v25 = vpack.c.bf16 %v1428_v20, %v1427_v19 }
 0x9b3   :  { %2144 = vmatprep.subr.bf16.mxu1 %v1464_v47  ;;  %v1434_v24 = vld [vmem:[#allocation3 + $0x21] sm:$0xff]  ;;  %v1444_v26 = vpack.c.bf16 %v1438_v22, %v1437_v21 }
 0x9b4   :  { %1946 = vmatpush3.bf16.msra.mxu0 %v1448_v57  ;;  %v1443_v27 = vpack.c.bf16 %v1434_v24, %v1433_v23  ;;  %v1430_v29 = vld [vmem:[#allocation3 + $0x20] sm:$0xff] }
 0x9b5   :  { %1947 = vmatprep.subr.bf16.mxu0 %v1457_v60  ;;  %v1442_v30 = vpack.c.bf16 %v1430_v29, %v1429_v28 }
 0x9b6   :  { %2145 = vmatpush3.bf16.msra.mxu1 %v1464_v47 }
 0x9b7   :  { %2146 = vmatprep.subr.bf16.mxu1 %v1465_v63 }
 0x9b8   :  { %1948 = vmatpush3.bf16.msra.mxu0 %v1449_v0 }
 0x9b9   :  { %1949 = vmatprep.subr.bf16.mxu0 %v1458_v2 }
 0x9ba   :  { %2147 = vmatpush3.bf16.msra.mxu1 %v1465_v63 }
 0x9bb   :  { %2148 = vmatprep.subr.bf16.mxu1 %v1466_v3 }
 0x9bc   :  { %1950 = vmatpush3.bf16.msra.mxu0 %v1450_v5 }
 0x9bd   :  { %1951 = vmatprep.subr.bf16.mxu0 %v1459_v13 }
 0x9be   :  { %2149 = vmatpush3.bf16.msra.mxu1 %v1466_v3 }
 0x9bf   :  { %2150 = vmatprep.subr.bf16.mxu1 %v1467_v14 }
 0x9c0   :  { %1952 = vmatpush3.bf16.msra.mxu0 %v1451_v15 }
 0x9c1   :  { %1953 = vmatprep.subr.bf16.mxu0 %v1460_v16 }
 0x9c2   :  { %2151 = vmatpush3.bf16.msra.mxu1 %v1467_v14 }
 0x9c3   :  { %2152 = vmatprep.subr.bf16.mxu1 %v1468_v18 }
 0x9c4   :  { %1954 = vmatpush3.bf16.msra.mxu0 %v1452_v17 }
 0x9c6   :  { %2153 = vmatpush3.bf16.msra.mxu1 %v1468_v18 }
 0x9c7   :  { %1507 = vmatmul.mubr.bf16.vlgmr.msra.gmra.mrb[56].mxu0 %v1439_v25 }
 0x9c8   :  { %1514 = vmatprep.mubr.bf16.mxu0 %v1443_v27 }
 0x9c9   :  { %2155 = vmatmul.mubr.bf16.vlgmr.msra.gmra.mrb[36].mxu1 %v1444_v26 }
 0x9cf   :  { %1515 = vmatmul.mubr.bf16.gmra.mrb[60].mxu0 %v1442_v30 }
 0xa9a   :  { %v1955_v31 = vpop.f32.mrb[56].mxu0 }
 0xa9b   :  { %v1956_v32 = vpop.f32.mrb[57].mxu0 }
 0xa9c   :  { %v2156_v33 = vpop.f32.mrb[36].mxu1  ;;  %v1957_v35 = vadd.f32 %v1956_v32, %v1955_v31  ;;  %v1958_v36 = vpop.f32.mrb[58].mxu0 }
 0xa9d   :  { %v1557_v37 = vpop.f32.mrb[37].mxu1  ;;  %v1959_v38 = vpop.f32.mrb[59].mxu0 }
 0xa9e   :  { %v2157_v39 = vpop.f32.mrb[38].mxu1  ;;  %v1960_v40 = vadd.f32 %v1959_v38, %v1958_v36  ;;  %v1509_v59 = vadd.f32 %v1957_v35, %v1652_v34 }
 0xa9f   :  { %v1560_v61 = vpop.f32.mrb[39].mxu1 }
 0xaa0   :  { %v1558_v41 = vadd.f32 %v1557_v37, %v1509_v59  ;;  %v1512_v42 = vadd.f32 %v1960_v40, %v1652_v34 }
 0xaa2   :  { %v1572_v62 = vadd.f32 %v1558_v41, %v2661_v51  ;;  %v1561_v52 = vadd.f32 %v1560_v61, %v1512_v42  ;;  %v1961_v54 = vpop.f32.mrb[60].mxu0 }
 0xaa3   :  { %v1962_v1 = vpop.f32.mrb[61].mxu0 }
 0xaa4   :  { %1576 = vst [vmem:[%s2732_s5] sm:$0xff] %v1572_v62  ;;  %1577 = vst [vmem:[%s2732_s5 + $0x8] sm:$0xff] %v1561_v52  ;;  %v1963_v43 = vadd.f32 %v1962_v1, %v1961_v54  ;;  %v1964_v55 = vpop.f32.mrb[62].mxu0 }
 0xaa5   :  { %v1965_v58 = vpop.f32.mrb[63].mxu0 }
 0xaa6   :  { %v1517_v44 = vadd.f32 %v1963_v43, %v1652_v34  ;;  %v1966_v45 = vadd.f32 %v1965_v58, %v1964_v55 }
 0xaa8   :  { %v1566_v46 = vadd.f32 %v2156_v33, %v1517_v44  ;;  %v1520_v7 = vadd.f32 %v1966_v45, %v1652_v34 }
 0xaaa   :  { %v1574_v51 = vadd.f32 %v2659_v50, %v1566_v46  ;;  %v1569_v4 = vadd.f32 %v2157_v39, %v1520_v7 }
 0xaac   :  { %1578 = vst [vmem:[%s2732_s5 + $0x10] sm:$0xff] %v1574_v51  ;;  %1579 = vst [vmem:[%s2732_s5 + $0x18] sm:$0xff] %v1569_v4 }
 0xaad   :  { %1584 = vsyncmov [#allocation5] }
 0xab0   :  { %s1585_s29 = vpop.sfrf %1584 }
 0xab1   :  { %p1653_p1 = scmp.ne.s32.totalorder %s1585_s29, 0 }
 0xab3   :  { %1589 = shalt.err (%p1653_p1)  }
 0xab4   :  { %1591 = vsyncmov [#allocation5 + $0x1] }
 0xab7   :  { %s1592_s6 = vpop.sfrf %1591 }
 0xab8   :  { %p1654_p9 = scmp.ne.s32.totalorder %s1592_s6, 0 }
 0xaba   :  { %1596 = shalt.err (%p1654_p9)  }
 0xabb   :  { %1598 = vsyncmov [#allocation5 + $0x2] }
 0xabe   :  { %s1599_s7 = vpop.sfrf %1598 }
 0xabf   :  { %p1655_p10 = scmp.ne.s32.totalorder %s1599_s7, 0 }
 0xac1   :  { %1603 = shalt.err (%p1655_p10)  }
 0xac2   :  { %1605 = vsyncmov [#allocation5 + $0x3] }
 0xac5   :  { %s1606_s8 = vpop.sfrf %1605 }
 0xac6   :  { %p1656_p11 = scmp.ne.s32.totalorder %s1606_s8, 0 }
 0xac8   :  { %1610 = shalt.err (%p1656_p11)  }
 0xac9   :  { %1612 = vsyncmov [#allocation5 + $0x4] }
 0xacc   :  { %s1613_s9 = vpop.sfrf %1612 }
 0xacd   :  { %p1657_p12 = scmp.ne.s32.totalorder %s1613_s9, 0 }
 0xacf   :  { %1617 = shalt.err (%p1657_p12)  }
 0xad0   :  { %1619 = vsyncmov [#allocation5 + $0x5] }
 0xad3   :  { %s1620_s5 = vpop.sfrf %1619 }
 0xad4   :  { %p1658_p13 = scmp.ne.s32.totalorder %s1620_s5, 0 }
 0xad6   :  { %1624 = shalt.err (%p1658_p13)  }
 0xad7   :  { %1626 = vsyncmov [#allocation5 + $0x6] }
 0xada   :  { %s1627_s10 = vpop.sfrf %1626 }
 0xadb   :  { %p1659_p0 = scmp.ne.s32.totalorder %s1627_s10, 0 }
 0xadd   :  { %1631 = shalt.err (%p1659_p0)  }
 0xade   :  { %1633 = vsyncmov [#allocation5 + $0x7] }
 0xae1   :  { %s1634_s11 = vpop.sfrf %1633 }
 0xae2   :  { %p1660_p3 = scmp.ne.s32.totalorder %s1634_s11, 0 }
 0xae4   :  { %1638 = shalt.err (%p1660_p3)  }

</bundles_post_ra>
